<compile_context>
chip_gen: v7x
topology: tpu7x:2x2x1
jax: 0.10.0
libtpu: 0.0.40
codegen_flags: <defaults>
</compile_context>

<pallas_src>
import math

import jax
import jax.numpy as jnp
from jax import lax
from jax.experimental import pallas as pl
from jax.experimental.pallas import tpu as pltpu

GEN_NAMES = ("text", "action", "decision", "inference", "prediction", "reasoning")
LN_EPS = 1e-5  # torch.nn.LayerNorm default
_INV_SQRT2 = 1.0 / math.sqrt(2.0)
_SQRT_2_OVER_PI = math.sqrt(2.0 / math.pi)


def _round_up(a, b):
    return (a + b - 1) // b * b


def _gelu_exact(v):
    # matches torch.nn.GELU() default (erf-based)
    return 0.5 * v * (1.0 + lax.erf(v * _INV_SQRT2))


def _gelu_tanh(v):
    # tanh approximation -> EUP slot (free alongside the MXU), tiny numeric divergence
    return 0.5 * v * (1.0 + jnp.tanh(_SQRT_2_OVER_PI * (v + 0.044715 * v * v * v)))


# ---------------------------------------------------------------------------
# fused kernel: one row tile per grid step, static loop over the G generators
# ---------------------------------------------------------------------------
def _make_generator_kernel(hidden_gelu_approx: bool):
    hidden_gelu = _gelu_tanh if hidden_gelu_approx else _gelu_exact

    def kernel(comb_in_ref, gate_ref,
               w1_ref, b1_ref, w2_ref, b2_ref,
               wint_ref, bint_ref, gamma_ref, beta_ref,
               mode_out_ref, out_ref):
        G = w1_ref.shape[0]
        xb = comb_in_ref[...]                         # (tile_m, H), compute dtype
        gates = gate_ref[...]                         # (tile_m, G), f32

        acc = None
        for g in range(G):                            # static unroll over generators
            # generator g: Linear -> GELU -> Linear (f32 MXU accumulation)
            h = jnp.dot(xb, w1_ref[g], preferred_element_type=jnp.float32) + b1_ref[g]
            h = hidden_gelu(h)
            h = jnp.dot(h.astype(xb.dtype), w2_ref[g],
                        preferred_element_type=jnp.float32) + b2_ref[g]

            # per-row gate: static lane slice of the resident (tile_m, G) block
            w_g = gates[:, g:g + 1]                   # (tile_m, 1)
            scaled = h * w_g                          # weighted mode output (f32)
            mode_out_ref[g] = scaled.astype(mode_out_ref.dtype)

            # integration: cat(outputs,-1) @ W_int == sum_g scaled_g @ Wint[g]
            contrib = jnp.dot(scaled.astype(xb.dtype), wint_ref[g],
                              preferred_element_type=jnp.float32)
            acc = contrib if acc is None else acc + contrib

        # LayerNorm + GELU epilogue (f32 statistics).
        # Padded rows (m_pad > M) see pre == bint only: garbage but finite (var+eps>0),
        # and they are sliced off with [:M] in the wrapper -- do not remove that slice.
        pre = acc + bint_ref[...]
        mu = jnp.mean(pre, axis=-1, keepdims=True)
        var = jnp.mean((pre - mu) ** 2, axis=-1, keepdims=True)
        norm = (pre - mu) * lax.rsqrt(var + LN_EPS)
        out_ref[...] = _gelu_exact(norm * gamma_ref[...] + beta_ref[...]).astype(
            out_ref.dtype)

    return kernel


# ---------------------------------------------------------------------------
# wrapper
# ---------------------------------------------------------------------------
def output_generator_forward(x, context, params, *,
                             compute_dtype=jnp.float32,
                             mode_out_dtype=None,
                             hidden_gelu_approx=True,
                             tile_m_target=512):
    B, S, H = x.shape
    G = params["W1"].shape[0]
    if mode_out_dtype is None:
        mode_out_dtype = x.dtype
    comb_out_dtype = mode_out_dtype

    # --- mode selector in plain XLA (tiny 6-lane matmul; not worth a kernel launch) ---
    mean_ctx = jnp.mean(context.astype(jnp.float32), axis=1)             # (B, H)
    logits = mean_ctx @ params["Ws"].astype(jnp.float32) + params["bs"][0].astype(jnp.float32)
    probs = jax.nn.softmax(logits, axis=-1)                              # (B, G), f32

    # --- flatten (B,S) -> rows ---
    M = B * S
    combined = (x + context).reshape(M, H).astype(compute_dtype)         # single XLA add
    gates = jnp.broadcast_to(probs[:, None, :], (B, S, G)).reshape(M, G)

    # --- VMEM budget (resident weights single-buffered; row blocks double-buffered) ---
    cbytes = jnp.dtype(compute_dtype).itemsize
    mbytes = jnp.dtype(mode_out_dtype).itemsize
    obytes = jnp.dtype(comb_out_dtype).itemsize
    try:
        vmem_capacity = int(pltpu.get_tpu_info().vmem_capacity_bytes)
    except Exception:  # pragma: no cover - conservative default (v7x per-TC size)
        vmem_capacity = 64 * 1024 * 1024
    vmem_cap = int(0.75 * vmem_capacity)                                  # headroom for Mosaic

    resident = (3 * G * H * H * cbytes          # W1, W2, Wint (constant index -> 1 copy)
                + 2 * G * H * 4                 # b1, b2 (f32)
                + 3 * H * 4                     # bint, gamma, beta (f32)
                + 2 * 1024 * 1024)              # scheduler / semaphore headroom
    if resident > vmem_cap:
        # TODO(synk): stream weights over a (row, g) grid with pl.Buffered(3) instead.
        raise ValueError(f"resident weight set ({resident} B) exceeds VMEM cap ({vmem_cap} B); "
                         "reduce H or switch to a streaming-weight layout")

    per_row_pipelined = 2 * (H * cbytes          # combined input block
                             + G * 4             # gate block
                             + G * H * mbytes    # per-mode output blocks
                             + H * obytes        # combined output block
                             + H * 4)            # margin for internal f32 staging
    tile_m = min(tile_m_target, _round_up(M, 8))
    while tile_m > 8 and resident + tile_m * per_row_pipelined > vmem_cap:
        tile_m = max(8, _round_up(tile_m // 2, 8))

    m_pad = _round_up(M, tile_m)
    n_m = m_pad // tile_m
    if m_pad != M:
        combined = jnp.pad(combined, ((0, m_pad - M), (0, 0)))
        gates = jnp.pad(gates, ((0, m_pad - M), (0, 0)))

    vmem_limit = int(min(vmem_cap, max(resident + tile_m * per_row_pipelined,
                                       32 * 1024 * 1024)))

    cW1 = params["W1"].astype(compute_dtype)
    cW2 = params["W2"].astype(compute_dtype)
    cWint = params["Wint"].astype(compute_dtype)
    b1 = params["b1"].astype(jnp.float32)
    b2 = params["b2"].astype(jnp.float32)
    bint = params["bint"].astype(jnp.float32)
    gamma = params["gamma"].astype(jnp.float32)
    beta = params["beta"].astype(jnp.float32)

    grid_spec = pltpu.PrefetchScalarGridSpec(
        num_scalar_prefetch=0,
        grid=(n_m,),                                              # row tiles only
        in_specs=[
            pl.BlockSpec((tile_m, H), lambda m: (m, 0)),          # combined rows
            pl.BlockSpec((tile_m, G), lambda m: (m, 0)),          # per-row gates (f32)
            pl.BlockSpec((G, H, H), lambda m: (0, 0, 0)),         # W1 (VMEM-resident)
            pl.BlockSpec((G, 1, H), lambda m: (0, 0, 0)),         # b1
            pl.BlockSpec((G, H, H), lambda m: (0, 0, 0)),         # W2 (VMEM-resident)
            pl.BlockSpec((G, 1, H), lambda m: (0, 0, 0)),         # b2
            pl.BlockSpec((G, H, H), lambda m: (0, 0, 0)),         # Wint (VMEM-resident)
            pl.BlockSpec((1, H), lambda m: (0, 0)),               # bint
            pl.BlockSpec((1, H), lambda m: (0, 0)),               # LayerNorm gamma
            pl.BlockSpec((1, H), lambda m: (0, 0)),               # LayerNorm beta
        ],
        out_specs=[
            pl.BlockSpec((G, tile_m, H), lambda m: (0, m, 0)),    # per-mode outputs
            pl.BlockSpec((tile_m, H), lambda m: (m, 0)),          # combined output
        ],
    )

    mode_outs, comb = pl.pallas_call(
        _make_generator_kernel(hidden_gelu_approx),
        out_shape=(
            jax.ShapeDtypeStruct((G, m_pad, H), mode_out_dtype),
            jax.ShapeDtypeStruct((m_pad, H), comb_out_dtype),
        ),
        grid_spec=grid_spec,
        compiler_params=pltpu.CompilerParams(
            dimension_semantics=("parallel",),                    # megacore over row tiles
            vmem_limit_bytes=vmem_limit,
        ),
    )(combined, gates, cW1, b1, cW2, b2, cWint, bint, gamma, beta)

    out = {name: mode_outs[i, :M].reshape(B, S, H) for i, name in enumerate(GEN_NAMES)}
    out["combined"] = comb[:M].reshape(B, S, H)
    return out


# ---------------------------------------------------------------------------
# parameters + plain-JAX reference (mirrors the PyTorch module)
# ---------------------------------------------------------------------------
def init_params(key, H, G=6):
    ks = jax.random.split(key, 10)

    def w(k, shape, scale=0.05):
        return (scale * jax.random.normal(k, shape)).astype(jnp.float32)

    return {
        "W1": w(ks[0], (G, H, H)),
        "b1": w(ks[1], (G, 1, H), 0.02),
        "W2": w(ks[2], (G, H, H)),
        "b2": w(ks[3], (G, 1, H), 0.02),
        "Ws": w(ks[4], (H, G), 0.1),
        "bs": w(ks[5], (1, G), 0.02),
        "Wint": w(ks[6], (G, H, H)),     # slice g of the Linear(6H->H) weight, (in,out)
        "bint": w(ks[7], (1, H), 0.02),
        "gamma": 1.0 + w(ks[8], (1, H), 0.1),
        "beta": w(ks[9], (1, H), 0.02),
    }


def reference_forward(x, context, params):
    def gelu(v):
        return 0.5 * v * (1.0 + lax.erf(v / math.sqrt(2.0)))

    G = params["W1"].shape[0]
    mean_ctx = jnp.mean(context, axis=1)
    logits = mean_ctx @ params["Ws"] + params["bs"][0]
    probs = jax.nn.softmax(logits, axis=-1)
    combined = x + context

    outs = {}
    scaled_list = []
    for g, name in enumerate(GEN_NAMES):
        h = gelu(combined @ params["W1"][g] + params["b1"][g, 0])
        h = h @ params["W2"][g] + params["b2"][g, 0]
        scaled = h * probs[:, g][:, None, None]
        outs[name] = scaled
        scaled_list.append(scaled)

    cat = jnp.concatenate(scaled_list, axis=-1)                              # (B,S,6H)
    Wcat = jnp.concatenate([params["Wint"][g] for g in range(G)], axis=0)    # (6H,H)
    pre = cat @ Wcat + params["bint"][0]
    mu = jnp.mean(pre, axis=-1, keepdims=True)
    var = jnp.mean((pre - mu) ** 2, axis=-1, keepdims=True)
    norm = (pre - mu) / jnp.sqrt(var + LN_EPS)
    outs["combined"] = gelu(norm * params["gamma"][0] + params["beta"][0])
    return outs


if __name__ == "__main__":
    B, S, H = 2, 8, 32
    key = jax.random.PRNGKey(0)
    kx, kc, kp = jax.random.split(key, 3)
    x = jax.random.normal(kx, (B, S, H), jnp.float32)
    context = jax.random.normal(kc, (B, S, H), jnp.float32)
    params = init_params(kp, H)

    ref = reference_forward(x, context, params)

    # f32 verification path: exact erf GELU everywhere, tight tolerance.
    outs = output_generator_forward(x, context, params,
                                    compute_dtype=jnp.float32,
                                    hidden_gelu_approx=False)
    jax.block_until_ready(outs)
    for name in list(GEN_NAMES) + ["combined"]:
        assert outs[name].shape == ref[name].shape, f"shape mismatch for {name}"
        assert bool(jnp.allclose(outs[name], ref[name], atol=5e-3, rtol=5e-3)), (
            f"value mismatch for {name}"
        )

    # performance path: bf16 weights / MXU inputs / outputs + tanh GELU on the hidden
    # (recommended on v5e/v7x); f32 accumulation + f32 LN statistics inside the kernel.
    outs_bf16 = output_generator_forward(x, context, params,
                                         compute_dtype=jnp.bfloat16,
                                         mode_out_dtype=jnp.bfloat16)
    jax.block_until_ready(outs_bf16)
    for name in list(GEN_NAMES) + ["combined"]:
        assert outs_bf16[name].shape == ref[name].shape, f"bf16 shape mismatch for {name}"
        assert bool(jnp.allclose(outs_bf16[name].astype(jnp.float32), ref[name],
                                 atol=1e-1, rtol=1e-1)), f"bf16 value mismatch for {name}"

    print("KERNEL_OK")
</pallas_src>

<mosaic_0001>
module attributes {stable_mosaic.version = 11 : i64} {
  func.func @kernel(%arg0: i32, %arg1: memref<16x32xf32, #tpu.memory_space<vmem>>, %arg2: memref<16x6xf32, #tpu.memory_space<vmem>>, %arg3: memref<6x32x32xf32, #tpu.memory_space<vmem>>, %arg4: memref<6x1x32xf32, #tpu.memory_space<vmem>>, %arg5: memref<6x32x32xf32, #tpu.memory_space<vmem>>, %arg6: memref<6x1x32xf32, #tpu.memory_space<vmem>>, %arg7: memref<6x32x32xf32, #tpu.memory_space<vmem>>, %arg8: memref<1x32xf32, #tpu.memory_space<vmem>>, %arg9: memref<1x32xf32, #tpu.memory_space<vmem>>, %arg10: memref<1x32xf32, #tpu.memory_space<vmem>>, %arg11: memref<6x16x32xf32, #tpu.memory_space<vmem>>, %arg12: memref<16x32xf32, #tpu.memory_space<vmem>>) attributes {dimension_semantics = [#tpu.dimension_semantics<parallel>], iteration_bounds = array<i64: 1>, scalar_prefetch = 0 : i64, scratch_operands = 0 : i64, tpu.core_type = #tpu.core_type<tc>, window_params = [{transform_indices = @transform_0, window_bounds = array<i64: 16, 32>}, {transform_indices = @transform_1, window_bounds = array<i64: 16, 6>}, {pipeline_mode = #tpu.pipeline_mode<synchronous>, transform_indices = @transform_2, window_bounds = array<i64: 6, 32, 32>}, {pipeline_mode = #tpu.pipeline_mode<synchronous>, transform_indices = @transform_3, window_bounds = array<i64: 6, 1, 32>}, {pipeline_mode = #tpu.pipeline_mode<synchronous>, transform_indices = @transform_4, window_bounds = array<i64: 6, 32, 32>}, {pipeline_mode = #tpu.pipeline_mode<synchronous>, transform_indices = @transform_5, window_bounds = array<i64: 6, 1, 32>}, {pipeline_mode = #tpu.pipeline_mode<synchronous>, transform_indices = @transform_6, window_bounds = array<i64: 6, 32, 32>}, {pipeline_mode = #tpu.pipeline_mode<synchronous>, transform_indices = @transform_7, window_bounds = array<i64: 1, 32>}, {pipeline_mode = #tpu.pipeline_mode<synchronous>, transform_indices = @transform_8, window_bounds = array<i64: 1, 32>}, {pipeline_mode = #tpu.pipeline_mode<synchronous>, transform_indices = @transform_9, window_bounds = array<i64: 1, 32>}, {transform_indices = @transform_10, window_bounds = array<i64: 6, 16, 32>}, {transform_indices = @transform_11, window_bounds = array<i64: 16, 32>}]} {
    %c0 = arith.constant 0 : index
    %c0_0 = arith.constant 0 : index
    %0 = vector.load %arg1[%c0, %c0_0] : memref<16x32xf32, #tpu.memory_space<vmem>>, vector<16x32xf32>
    %c0_1 = arith.constant 0 : index
    %c0_2 = arith.constant 0 : index
    %1 = vector.load %arg2[%c0_1, %c0_2] : memref<16x6xf32, #tpu.memory_space<vmem>>, vector<16x6xf32>
    %c0_3 = arith.constant 0 : index
    %c0_4 = arith.constant 0 : index
    %c0_5 = arith.constant 0 : index
    %2 = vector.load %arg3[%c0_3, %c0_4, %c0_5] : memref<6x32x32xf32, #tpu.memory_space<vmem>>, vector<1x32x32xf32>
    %3 = vector.shape_cast %2 : vector<1x32x32xf32> to vector<32x32xf32>
    %cst = arith.constant dense<0.000000e+00> : vector<16x32xf32>
    %4 = tpu.matmul %0, %3, %cst {dimension_numbers = #tpu.dot_dimension_numbers<[1], [0], [0], [1], [0, 0, 1, 1], [], []>} : vector<16x32xf32>, vector<32x32xf32>, vector<16x32xf32> -> vector<16x32xf32>
    %c0_6 = arith.constant 0 : index
    %c0_7 = arith.constant 0 : index
    %c0_8 = arith.constant 0 : index
    %5 = vector.load %arg4[%c0_6, %c0_7, %c0_8] : memref<6x1x32xf32, #tpu.memory_space<vmem>>, vector<1x1x32xf32>
    %6 = vector.shape_cast %5 : vector<1x1x32xf32> to vector<1x32xf32>
    %7 = vector.broadcast %6 : vector<1x32xf32> to vector<16x32xf32>
    %8 = arith.addf %4, %7 : vector<16x32xf32>
    %cst_9 = arith.constant 5.000000e-01 : f32
    %9 = vector.broadcast %cst_9 : f32 to vector<16x32xf32>
    %10 = arith.mulf %9, %8 : vector<16x32xf32>
    %cst_10 = arith.constant 0.707106769 : f32
    %11 = vector.broadcast %cst_10 : f32 to vector<16x32xf32>
    %12 = arith.mulf %8, %11 : vector<16x32xf32>
    %13 = math.erf %12 : vector<16x32xf32>
    %cst_11 = arith.constant 1.000000e+00 : f32
    %14 = vector.broadcast %cst_11 : f32 to vector<16x32xf32>
    %15 = arith.addf %14, %13 : vector<16x32xf32>
    %16 = arith.mulf %10, %15 : vector<16x32xf32>
    %c0_12 = arith.constant 0 : index
    %c0_13 = arith.constant 0 : index
    %c0_14 = arith.constant 0 : index
    %17 = vector.load %arg5[%c0_12, %c0_13, %c0_14] : memref<6x32x32xf32, #tpu.memory_space<vmem>>, vector<1x32x32xf32>
    %18 = vector.shape_cast %17 : vector<1x32x32xf32> to vector<32x32xf32>
    %cst_15 = arith.constant dense<0.000000e+00> : vector<16x32xf32>
    %19 = tpu.matmul %16, %18, %cst_15 {dimension_numbers = #tpu.dot_dimension_numbers<[1], [0], [0], [1], [0, 0, 1, 1], [], []>} : vector<16x32xf32>, vector<32x32xf32>, vector<16x32xf32> -> vector<16x32xf32>
    %c0_16 = arith.constant 0 : index
    %c0_17 = arith.constant 0 : index
    %c0_18 = arith.constant 0 : index
    %20 = vector.load %arg6[%c0_16, %c0_17, %c0_18] : memref<6x1x32xf32, #tpu.memory_space<vmem>>, vector<1x1x32xf32>
    %21 = vector.shape_cast %20 : vector<1x1x32xf32> to vector<1x32xf32>
    %22 = vector.broadcast %21 : vector<1x32xf32> to vector<16x32xf32>
    %23 = arith.addf %19, %22 : vector<16x32xf32>
    %24 = vector.extract_strided_slice %1 {offsets = [0, 0], sizes = [16, 1], strides = [1, 1]} : vector<16x6xf32> to vector<16x1xf32>
    %25 = vector.broadcast %24 : vector<16x1xf32> to vector<16x32xf32>
    %26 = arith.mulf %23, %25 : vector<16x32xf32>
    %c0_19 = arith.constant 0 : index
    %c0_20 = arith.constant 0 : index
    %c0_21 = arith.constant 0 : index
    %27 = vector.load %arg11[%c0_19, %c0_20, %c0_21] : memref<6x16x32xf32, #tpu.memory_space<vmem>>, vector<1x16x32xf32>
    %28 = vector.shape_cast %27 : vector<1x16x32xf32> to vector<16x32xf32>
    %29 = vector.shape_cast %26 : vector<16x32xf32> to vector<1x16x32xf32>
    tpu.vector_store %arg11[%c0_19, %c0_20, %c0_21], %29 {strides = array<i32>} : memref<6x16x32xf32, #tpu.memory_space<vmem>>, vector<1x16x32xf32>,
    %c0_22 = arith.constant 0 : index
    %c0_23 = arith.constant 0 : index
    %c0_24 = arith.constant 0 : index
    %30 = vector.load %arg7[%c0_22, %c0_23, %c0_24] : memref<6x32x32xf32, #tpu.memory_space<vmem>>, vector<1x32x32xf32>
    %31 = vector.shape_cast %30 : vector<1x32x32xf32> to vector<32x32xf32>
    %cst_25 = arith.constant dense<0.000000e+00> : vector<16x32xf32>
    %32 = tpu.matmul %26, %31, %cst_25 {dimension_numbers = #tpu.dot_dimension_numbers<[1], [0], [0], [1], [0, 0, 1, 1], [], []>} : vector<16x32xf32>, vector<32x32xf32>, vector<16x32xf32> -> vector<16x32xf32>
    %c1 = arith.constant 1 : index
    %c0_26 = arith.constant 0 : index
    %c0_27 = arith.constant 0 : index
    %33 = vector.load %arg3[%c1, %c0_26, %c0_27] : memref<6x32x32xf32, #tpu.memory_space<vmem>>, vector<1x32x32xf32>
    %34 = vector.shape_cast %33 : vector<1x32x32xf32> to vector<32x32xf32>
    %cst_28 = arith.constant dense<0.000000e+00> : vector<16x32xf32>
    %35 = tpu.matmul %0, %34, %cst_28 {dimension_numbers = #tpu.dot_dimension_numbers<[1], [0], [0], [1], [0, 0, 1, 1], [], []>} : vector<16x32xf32>, vector<32x32xf32>, vector<16x32xf32> -> vector<16x32xf32>
    %c1_29 = arith.constant 1 : index
    %c0_30 = arith.constant 0 : index
    %c0_31 = arith.constant 0 : index
    %36 = vector.load %arg4[%c1_29, %c0_30, %c0_31] : memref<6x1x32xf32, #tpu.memory_space<vmem>>, vector<1x1x32xf32>
    %37 = vector.shape_cast %36 : vector<1x1x32xf32> to vector<1x32xf32>
    %38 = vector.broadcast %37 : vector<1x32xf32> to vector<16x32xf32>
    %39 = arith.addf %35, %38 : vector<16x32xf32>
    %cst_32 = arith.constant 5.000000e-01 : f32
    %40 = vector.broadcast %cst_32 : f32 to vector<16x32xf32>
    %41 = arith.mulf %40, %39 : vector<16x32xf32>
    %cst_33 = arith.constant 0.707106769 : f32
    %42 = vector.broadcast %cst_33 : f32 to vector<16x32xf32>
    %43 = arith.mulf %39, %42 : vector<16x32xf32>
    %44 = math.erf %43 : vector<16x32xf32>
    %cst_34 = arith.constant 1.000000e+00 : f32
    %45 = vector.broadcast %cst_34 : f32 to vector<16x32xf32>
    %46 = arith.addf %45, %44 : vector<16x32xf32>
    %47 = arith.mulf %41, %46 : vector<16x32xf32>
    %c1_35 = arith.constant 1 : index
    %c0_36 = arith.constant 0 : index
    %c0_37 = arith.constant 0 : index
    %48 = vector.load %arg5[%c1_35, %c0_36, %c0_37] : memref<6x32x32xf32, #tpu.memory_space<vmem>>, vector<1x32x32xf32>
    %49 = vector.shape_cast %48 : vector<1x32x32xf32> to vector<32x32xf32>
    %cst_38 = arith.constant dense<0.000000e+00> : vector<16x32xf32>
    %50 = tpu.matmul %47, %49, %cst_38 {dimension_numbers = #tpu.dot_dimension_numbers<[1], [0], [0], [1], [0, 0, 1, 1], [], []>} : vector<16x32xf32>, vector<32x32xf32>, vector<16x32xf32> -> vector<16x32xf32>
    %c1_39 = arith.constant 1 : index
    %c0_40 = arith.constant 0 : index
    %c0_41 = arith.constant 0 : index
    %51 = vector.load %arg6[%c1_39, %c0_40, %c0_41] : memref<6x1x32xf32, #tpu.memory_space<vmem>>, vector<1x1x32xf32>
    %52 = vector.shape_cast %51 : vector<1x1x32xf32> to vector<1x32xf32>
    %53 = vector.broadcast %52 : vector<1x32xf32> to vector<16x32xf32>
    %54 = arith.addf %50, %53 : vector<16x32xf32>
    %55 = vector.extract_strided_slice %1 {offsets = [0, 1], sizes = [16, 1], strides = [1, 1]} : vector<16x6xf32> to vector<16x1xf32>
    %56 = vector.broadcast %55 : vector<16x1xf32> to vector<16x32xf32>
    %57 = arith.mulf %54, %56 : vector<16x32xf32>
    %c1_42 = arith.constant 1 : index
    %c0_43 = arith.constant 0 : index
    %c0_44 = arith.constant 0 : index
    %58 = vector.load %arg11[%c1_42, %c0_43, %c0_44] : memref<6x16x32xf32, #tpu.memory_space<vmem>>, vector<1x16x32xf32>
    %59 = vector.shape_cast %58 : vector<1x16x32xf32> to vector<16x32xf32>
    %60 = vector.shape_cast %57 : vector<16x32xf32> to vector<1x16x32xf32>
    tpu.vector_store %arg11[%c1_42, %c0_43, %c0_44], %60 {strides = array<i32>} : memref<6x16x32xf32, #tpu.memory_space<vmem>>, vector<1x16x32xf32>,
    %c1_45 = arith.constant 1 : index
    %c0_46 = arith.constant 0 : index
    %c0_47 = arith.constant 0 : index
    %61 = vector.load %arg7[%c1_45, %c0_46, %c0_47] : memref<6x32x32xf32, #tpu.memory_space<vmem>>, vector<1x32x32xf32>
    %62 = vector.shape_cast %61 : vector<1x32x32xf32> to vector<32x32xf32>
    %cst_48 = arith.constant dense<0.000000e+00> : vector<16x32xf32>
    %63 = tpu.matmul %57, %62, %cst_48 {dimension_numbers = #tpu.dot_dimension_numbers<[1], [0], [0], [1], [0, 0, 1, 1], [], []>} : vector<16x32xf32>, vector<32x32xf32>, vector<16x32xf32> -> vector<16x32xf32>
    %64 = arith.addf %32, %63 : vector<16x32xf32>
    %c2 = arith.constant 2 : index
    %c0_49 = arith.constant 0 : index
    %c0_50 = arith.constant 0 : index
    %65 = vector.load %arg3[%c2, %c0_49, %c0_50] : memref<6x32x32xf32, #tpu.memory_space<vmem>>, vector<1x32x32xf32>
    %66 = vector.shape_cast %65 : vector<1x32x32xf32> to vector<32x32xf32>
    %cst_51 = arith.constant dense<0.000000e+00> : vector<16x32xf32>
    %67 = tpu.matmul %0, %66, %cst_51 {dimension_numbers = #tpu.dot_dimension_numbers<[1], [0], [0], [1], [0, 0, 1, 1], [], []>} : vector<16x32xf32>, vector<32x32xf32>, vector<16x32xf32> -> vector<16x32xf32>
    %c2_52 = arith.constant 2 : index
    %c0_53 = arith.constant 0 : index
    %c0_54 = arith.constant 0 : index
    %68 = vector.load %arg4[%c2_52, %c0_53, %c0_54] : memref<6x1x32xf32, #tpu.memory_space<vmem>>, vector<1x1x32xf32>
    %69 = vector.shape_cast %68 : vector<1x1x32xf32> to vector<1x32xf32>
    %70 = vector.broadcast %69 : vector<1x32xf32> to vector<16x32xf32>
    %71 = arith.addf %67, %70 : vector<16x32xf32>
    %cst_55 = arith.constant 5.000000e-01 : f32
    %72 = vector.broadcast %cst_55 : f32 to vector<16x32xf32>
    %73 = arith.mulf %72, %71 : vector<16x32xf32>
    %cst_56 = arith.constant 0.707106769 : f32
    %74 = vector.broadcast %cst_56 : f32 to vector<16x32xf32>
    %75 = arith.mulf %71, %74 : vector<16x32xf32>
    %76 = math.erf %75 : vector<16x32xf32>
    %cst_57 = arith.constant 1.000000e+00 : f32
    %77 = vector.broadcast %cst_57 : f32 to vector<16x32xf32>
    %78 = arith.addf %77, %76 : vector<16x32xf32>
    %79 = arith.mulf %73, %78 : vector<16x32xf32>
    %c2_58 = arith.constant 2 : index
    %c0_59 = arith.constant 0 : index
    %c0_60 = arith.constant 0 : index
    %80 = vector.load %arg5[%c2_58, %c0_59, %c0_60] : memref<6x32x32xf32, #tpu.memory_space<vmem>>, vector<1x32x32xf32>
    %81 = vector.shape_cast %80 : vector<1x32x32xf32> to vector<32x32xf32>
    %cst_61 = arith.constant dense<0.000000e+00> : vector<16x32xf32>
    %82 = tpu.matmul %79, %81, %cst_61 {dimension_numbers = #tpu.dot_dimension_numbers<[1], [0], [0], [1], [0, 0, 1, 1], [], []>} : vector<16x32xf32>, vector<32x32xf32>, vector<16x32xf32> -> vector<16x32xf32>
    %c2_62 = arith.constant 2 : index
    %c0_63 = arith.constant 0 : index
    %c0_64 = arith.constant 0 : index
    %83 = vector.load %arg6[%c2_62, %c0_63, %c0_64] : memref<6x1x32xf32, #tpu.memory_space<vmem>>, vector<1x1x32xf32>
    %84 = vector.shape_cast %83 : vector<1x1x32xf32> to vector<1x32xf32>
    %85 = vector.broadcast %84 : vector<1x32xf32> to vector<16x32xf32>
    %86 = arith.addf %82, %85 : vector<16x32xf32>
    %87 = vector.extract_strided_slice %1 {offsets = [0, 2], sizes = [16, 1], strides = [1, 1]} : vector<16x6xf32> to vector<16x1xf32>
    %88 = vector.broadcast %87 : vector<16x1xf32> to vector<16x32xf32>
    %89 = arith.mulf %86, %88 : vector<16x32xf32>
    %c2_65 = arith.constant 2 : index
    %c0_66 = arith.constant 0 : index
    %c0_67 = arith.constant 0 : index
    %90 = vector.load %arg11[%c2_65, %c0_66, %c0_67] : memref<6x16x32xf32, #tpu.memory_space<vmem>>, vector<1x16x32xf32>
    %91 = vector.shape_cast %90 : vector<1x16x32xf32> to vector<16x32xf32>
    %92 = vector.shape_cast %89 : vector<16x32xf32> to vector<1x16x32xf32>
    tpu.vector_store %arg11[%c2_65, %c0_66, %c0_67], %92 {strides = array<i32>} : memref<6x16x32xf32, #tpu.memory_space<vmem>>, vector<1x16x32xf32>,
    %c2_68 = arith.constant 2 : index
    %c0_69 = arith.constant 0 : index
    %c0_70 = arith.constant 0 : index
    %93 = vector.load %arg7[%c2_68, %c0_69, %c0_70] : memref<6x32x32xf32, #tpu.memory_space<vmem>>, vector<1x32x32xf32>
    %94 = vector.shape_cast %93 : vector<1x32x32xf32> to vector<32x32xf32>
    %cst_71 = arith.constant dense<0.000000e+00> : vector<16x32xf32>
    %95 = tpu.matmul %89, %94, %cst_71 {dimension_numbers = #tpu.dot_dimension_numbers<[1], [0], [0], [1], [0, 0, 1, 1], [], []>} : vector<16x32xf32>, vector<32x32xf32>, vector<16x32xf32> -> vector<16x32xf32>
    %96 = arith.addf %64, %95 : vector<16x32xf32>
    %c3 = arith.constant 3 : index
    %c0_72 = arith.constant 0 : index
    %c0_73 = arith.constant 0 : index
    %97 = vector.load %arg3[%c3, %c0_72, %c0_73] : memref<6x32x32xf32, #tpu.memory_space<vmem>>, vector<1x32x32xf32>
    %98 = vector.shape_cast %97 : vector<1x32x32xf32> to vector<32x32xf32>
    %cst_74 = arith.constant dense<0.000000e+00> : vector<16x32xf32>
    %99 = tpu.matmul %0, %98, %cst_74 {dimension_numbers = #tpu.dot_dimension_numbers<[1], [0], [0], [1], [0, 0, 1, 1], [], []>} : vector<16x32xf32>, vector<32x32xf32>, vector<16x32xf32> -> vector<16x32xf32>
    %c3_75 = arith.constant 3 : index
    %c0_76 = arith.constant 0 : index
    %c0_77 = arith.constant 0 : index
    %100 = vector.load %arg4[%c3_75, %c0_76, %c0_77] : memref<6x1x32xf32, #tpu.memory_space<vmem>>, vector<1x1x32xf32>
    %101 = vector.shape_cast %100 : vector<1x1x32xf32> to vector<1x32xf32>
    %102 = vector.broadcast %101 : vector<1x32xf32> to vector<16x32xf32>
    %103 = arith.addf %99, %102 : vector<16x32xf32>
    %cst_78 = arith.constant 5.000000e-01 : f32
    %104 = vector.broadcast %cst_78 : f32 to vector<16x32xf32>
    %105 = arith.mulf %104, %103 : vector<16x32xf32>
    %cst_79 = arith.constant 0.707106769 : f32
    %106 = vector.broadcast %cst_79 : f32 to vector<16x32xf32>
    %107 = arith.mulf %103, %106 : vector<16x32xf32>
    %108 = math.erf %107 : vector<16x32xf32>
    %cst_80 = arith.constant 1.000000e+00 : f32
    %109 = vector.broadcast %cst_80 : f32 to vector<16x32xf32>
    %110 = arith.addf %109, %108 : vector<16x32xf32>
    %111 = arith.mulf %105, %110 : vector<16x32xf32>
    %c3_81 = arith.constant 3 : index
    %c0_82 = arith.constant 0 : index
    %c0_83 = arith.constant 0 : index
    %112 = vector.load %arg5[%c3_81, %c0_82, %c0_83] : memref<6x32x32xf32, #tpu.memory_space<vmem>>, vector<1x32x32xf32>
    %113 = vector.shape_cast %112 : vector<1x32x32xf32> to vector<32x32xf32>
    %cst_84 = arith.constant dense<0.000000e+00> : vector<16x32xf32>
    %114 = tpu.matmul %111, %113, %cst_84 {dimension_numbers = #tpu.dot_dimension_numbers<[1], [0], [0], [1], [0, 0, 1, 1], [], []>} : vector<16x32xf32>, vector<32x32xf32>, vector<16x32xf32> -> vector<16x32xf32>
    %c3_85 = arith.constant 3 : index
    %c0_86 = arith.constant 0 : index
    %c0_87 = arith.constant 0 : index
    %115 = vector.load %arg6[%c3_85, %c0_86, %c0_87] : memref<6x1x32xf32, #tpu.memory_space<vmem>>, vector<1x1x32xf32>
    %116 = vector.shape_cast %115 : vector<1x1x32xf32> to vector<1x32xf32>
    %117 = vector.broadcast %116 : vector<1x32xf32> to vector<16x32xf32>
    %118 = arith.addf %114, %117 : vector<16x32xf32>
    %119 = vector.extract_strided_slice %1 {offsets = [0, 3], sizes = [16, 1], strides = [1, 1]} : vector<16x6xf32> to vector<16x1xf32>
    %120 = vector.broadcast %119 : vector<16x1xf32> to vector<16x32xf32>
    %121 = arith.mulf %118, %120 : vector<16x32xf32>
    %c3_88 = arith.constant 3 : index
    %c0_89 = arith.constant 0 : index
    %c0_90 = arith.constant 0 : index
    %122 = vector.load %arg11[%c3_88, %c0_89, %c0_90] : memref<6x16x32xf32, #tpu.memory_space<vmem>>, vector<1x16x32xf32>
    %123 = vector.shape_cast %122 : vector<1x16x32xf32> to vector<16x32xf32>
    %124 = vector.shape_cast %121 : vector<16x32xf32> to vector<1x16x32xf32>
    tpu.vector_store %arg11[%c3_88, %c0_89, %c0_90], %124 {strides = array<i32>} : memref<6x16x32xf32, #tpu.memory_space<vmem>>, vector<1x16x32xf32>,
    %c3_91 = arith.constant 3 : index
    %c0_92 = arith.constant 0 : index
    %c0_93 = arith.constant 0 : index
    %125 = vector.load %arg7[%c3_91, %c0_92, %c0_93] : memref<6x32x32xf32, #tpu.memory_space<vmem>>, vector<1x32x32xf32>
    %126 = vector.shape_cast %125 : vector<1x32x32xf32> to vector<32x32xf32>
    %cst_94 = arith.constant dense<0.000000e+00> : vector<16x32xf32>
    %127 = tpu.matmul %121, %126, %cst_94 {dimension_numbers = #tpu.dot_dimension_numbers<[1], [0], [0], [1], [0, 0, 1, 1], [], []>} : vector<16x32xf32>, vector<32x32xf32>, vector<16x32xf32> -> vector<16x32xf32>
    %128 = arith.addf %96, %127 : vector<16x32xf32>
    %c4 = arith.constant 4 : index
    %c0_95 = arith.constant 0 : index
    %c0_96 = arith.constant 0 : index
    %129 = vector.load %arg3[%c4, %c0_95, %c0_96] : memref<6x32x32xf32, #tpu.memory_space<vmem>>, vector<1x32x32xf32>
    %130 = vector.shape_cast %129 : vector<1x32x32xf32> to vector<32x32xf32>
    %cst_97 = arith.constant dense<0.000000e+00> : vector<16x32xf32>
    %131 = tpu.matmul %0, %130, %cst_97 {dimension_numbers = #tpu.dot_dimension_numbers<[1], [0], [0], [1], [0, 0, 1, 1], [], []>} : vector<16x32xf32>, vector<32x32xf32>, vector<16x32xf32> -> vector<16x32xf32>
    %c4_98 = arith.constant 4 : index
    %c0_99 = arith.constant 0 : index
    %c0_100 = arith.constant 0 : index
    %132 = vector.load %arg4[%c4_98, %c0_99, %c0_100] : memref<6x1x32xf32, #tpu.memory_space<vmem>>, vector<1x1x32xf32>
    %133 = vector.shape_cast %132 : vector<1x1x32xf32> to vector<1x32xf32>
    %134 = vector.broadcast %133 : vector<1x32xf32> to vector<16x32xf32>
    %135 = arith.addf %131, %134 : vector<16x32xf32>
    %cst_101 = arith.constant 5.000000e-01 : f32
    %136 = vector.broadcast %cst_101 : f32 to vector<16x32xf32>
    %137 = arith.mulf %136, %135 : vector<16x32xf32>
    %cst_102 = arith.constant 0.707106769 : f32
    %138 = vector.broadcast %cst_102 : f32 to vector<16x32xf32>
    %139 = arith.mulf %135, %138 : vector<16x32xf32>
    %140 = math.erf %139 : vector<16x32xf32>
    %cst_103 = arith.constant 1.000000e+00 : f32
    %141 = vector.broadcast %cst_103 : f32 to vector<16x32xf32>
    %142 = arith.addf %141, %140 : vector<16x32xf32>
    %143 = arith.mulf %137, %142 : vector<16x32xf32>
    %c4_104 = arith.constant 4 : index
    %c0_105 = arith.constant 0 : index
    %c0_106 = arith.constant 0 : index
    %144 = vector.load %arg5[%c4_104, %c0_105, %c0_106] : memref<6x32x32xf32, #tpu.memory_space<vmem>>, vector<1x32x32xf32>
    %145 = vector.shape_cast %144 : vector<1x32x32xf32> to vector<32x32xf32>
    %cst_107 = arith.constant dense<0.000000e+00> : vector<16x32xf32>
    %146 = tpu.matmul %143, %145, %cst_107 {dimension_numbers = #tpu.dot_dimension_numbers<[1], [0], [0], [1], [0, 0, 1, 1], [], []>} : vector<16x32xf32>, vector<32x32xf32>, vector<16x32xf32> -> vector<16x32xf32>
    %c4_108 = arith.constant 4 : index
    %c0_109 = arith.constant 0 : index
    %c0_110 = arith.constant 0 : index
    %147 = vector.load %arg6[%c4_108, %c0_109, %c0_110] : memref<6x1x32xf32, #tpu.memory_space<vmem>>, vector<1x1x32xf32>
    %148 = vector.shape_cast %147 : vector<1x1x32xf32> to vector<1x32xf32>
    %149 = vector.broadcast %148 : vector<1x32xf32> to vector<16x32xf32>
    %150 = arith.addf %146, %149 : vector<16x32xf32>
    %151 = vector.extract_strided_slice %1 {offsets = [0, 4], sizes = [16, 1], strides = [1, 1]} : vector<16x6xf32> to vector<16x1xf32>
    %152 = vector.broadcast %151 : vector<16x1xf32> to vector<16x32xf32>
    %153 = arith.mulf %150, %152 : vector<16x32xf32>
    %c4_111 = arith.constant 4 : index
    %c0_112 = arith.constant 0 : index
    %c0_113 = arith.constant 0 : index
    %154 = vector.load %arg11[%c4_111, %c0_112, %c0_113] : memref<6x16x32xf32, #tpu.memory_space<vmem>>, vector<1x16x32xf32>
    %155 = vector.shape_cast %154 : vector<1x16x32xf32> to vector<16x32xf32>
    %156 = vector.shape_cast %153 : vector<16x32xf32> to vector<1x16x32xf32>
    tpu.vector_store %arg11[%c4_111, %c0_112, %c0_113], %156 {strides = array<i32>} : memref<6x16x32xf32, #tpu.memory_space<vmem>>, vector<1x16x32xf32>,
    %c4_114 = arith.constant 4 : index
    %c0_115 = arith.constant 0 : index
    %c0_116 = arith.constant 0 : index
    %157 = vector.load %arg7[%c4_114, %c0_115, %c0_116] : memref<6x32x32xf32, #tpu.memory_space<vmem>>, vector<1x32x32xf32>
    %158 = vector.shape_cast %157 : vector<1x32x32xf32> to vector<32x32xf32>
    %cst_117 = arith.constant dense<0.000000e+00> : vector<16x32xf32>
    %159 = tpu.matmul %153, %158, %cst_117 {dimension_numbers = #tpu.dot_dimension_numbers<[1], [0], [0], [1], [0, 0, 1, 1], [], []>} : vector<16x32xf32>, vector<32x32xf32>, vector<16x32xf32> -> vector<16x32xf32>
    %160 = arith.addf %128, %159 : vector<16x32xf32>
    %c5 = arith.constant 5 : index
    %c0_118 = arith.constant 0 : index
    %c0_119 = arith.constant 0 : index
    %161 = vector.load %arg3[%c5, %c0_118, %c0_119] : memref<6x32x32xf32, #tpu.memory_space<vmem>>, vector<1x32x32xf32>
    %162 = vector.shape_cast %161 : vector<1x32x32xf32> to vector<32x32xf32>
    %cst_120 = arith.constant dense<0.000000e+00> : vector<16x32xf32>
    %163 = tpu.matmul %0, %162, %cst_120 {dimension_numbers = #tpu.dot_dimension_numbers<[1], [0], [0], [1], [0, 0, 1, 1], [], []>} : vector<16x32xf32>, vector<32x32xf32>, vector<16x32xf32> -> vector<16x32xf32>
    %c5_121 = arith.constant 5 : index
    %c0_122 = arith.constant 0 : index
    %c0_123 = arith.constant 0 : index
    %164 = vector.load %arg4[%c5_121, %c0_122, %c0_123] : memref<6x1x32xf32, #tpu.memory_space<vmem>>, vector<1x1x32xf32>
    %165 = vector.shape_cast %164 : vector<1x1x32xf32> to vector<1x32xf32>
    %166 = vector.broadcast %165 : vector<1x32xf32> to vector<16x32xf32>
    %167 = arith.addf %163, %166 : vector<16x32xf32>
    %cst_124 = arith.constant 5.000000e-01 : f32
    %168 = vector.broadcast %cst_124 : f32 to vector<16x32xf32>
    %169 = arith.mulf %168, %167 : vector<16x32xf32>
    %cst_125 = arith.constant 0.707106769 : f32
    %170 = vector.broadcast %cst_125 : f32 to vector<16x32xf32>
    %171 = arith.mulf %167, %170 : vector<16x32xf32>
    %172 = math.erf %171 : vector<16x32xf32>
    %cst_126 = arith.constant 1.000000e+00 : f32
    %173 = vector.broadcast %cst_126 : f32 to vector<16x32xf32>
    %174 = arith.addf %173, %172 : vector<16x32xf32>
    %175 = arith.mulf %169, %174 : vector<16x32xf32>
    %c5_127 = arith.constant 5 : index
    %c0_128 = arith.constant 0 : index
    %c0_129 = arith.constant 0 : index
    %176 = vector.load %arg5[%c5_127, %c0_128, %c0_129] : memref<6x32x32xf32, #tpu.memory_space<vmem>>, vector<1x32x32xf32>
    %177 = vector.shape_cast %176 : vector<1x32x32xf32> to vector<32x32xf32>
    %cst_130 = arith.constant dense<0.000000e+00> : vector<16x32xf32>
    %178 = tpu.matmul %175, %177, %cst_130 {dimension_numbers = #tpu.dot_dimension_numbers<[1], [0], [0], [1], [0, 0, 1, 1], [], []>} : vector<16x32xf32>, vector<32x32xf32>, vector<16x32xf32> -> vector<16x32xf32>
    %c5_131 = arith.constant 5 : index
    %c0_132 = arith.constant 0 : index
    %c0_133 = arith.constant 0 : index
    %179 = vector.load %arg6[%c5_131, %c0_132, %c0_133] : memref<6x1x32xf32, #tpu.memory_space<vmem>>, vector<1x1x32xf32>
    %180 = vector.shape_cast %179 : vector<1x1x32xf32> to vector<1x32xf32>
    %181 = vector.broadcast %180 : vector<1x32xf32> to vector<16x32xf32>
    %182 = arith.addf %178, %181 : vector<16x32xf32>
    %183 = vector.extract_strided_slice %1 {offsets = [0, 5], sizes = [16, 1], strides = [1, 1]} : vector<16x6xf32> to vector<16x1xf32>
    %184 = vector.broadcast %183 : vector<16x1xf32> to vector<16x32xf32>
    %185 = arith.mulf %182, %184 : vector<16x32xf32>
    %c5_134 = arith.constant 5 : index
    %c0_135 = arith.constant 0 : index
    %c0_136 = arith.constant 0 : index
    %186 = vector.load %arg11[%c5_134, %c0_135, %c0_136] : memref<6x16x32xf32, #tpu.memory_space<vmem>>, vector<1x16x32xf32>
    %187 = vector.shape_cast %186 : vector<1x16x32xf32> to vector<16x32xf32>
    %188 = vector.shape_cast %185 : vector<16x32xf32> to vector<1x16x32xf32>
    tpu.vector_store %arg11[%c5_134, %c0_135, %c0_136], %188 {strides = array<i32>} : memref<6x16x32xf32, #tpu.memory_space<vmem>>, vector<1x16x32xf32>,
    %c5_137 = arith.constant 5 : index
    %c0_138 = arith.constant 0 : index
    %c0_139 = arith.constant 0 : index
    %189 = vector.load %arg7[%c5_137, %c0_138, %c0_139] : memref<6x32x32xf32, #tpu.memory_space<vmem>>, vector<1x32x32xf32>
    %190 = vector.shape_cast %189 : vector<1x32x32xf32> to vector<32x32xf32>
    %cst_140 = arith.constant dense<0.000000e+00> : vector<16x32xf32>
    %191 = tpu.matmul %185, %190, %cst_140 {dimension_numbers = #tpu.dot_dimension_numbers<[1], [0], [0], [1], [0, 0, 1, 1], [], []>} : vector<16x32xf32>, vector<32x32xf32>, vector<16x32xf32> -> vector<16x32xf32>
    %192 = arith.addf %160, %191 : vector<16x32xf32>
    %c0_141 = arith.constant 0 : index
    %c0_142 = arith.constant 0 : index
    %193 = vector.load %arg8[%c0_141, %c0_142] : memref<1x32xf32, #tpu.memory_space<vmem>>, vector<1x32xf32>
    %194 = vector.broadcast %193 : vector<1x32xf32> to vector<16x32xf32>
    %195 = arith.addf %192, %194 : vector<16x32xf32>
    %cst_143 = arith.constant dense<0.000000e+00> : vector<16xf32>
    %196 = vector.multi_reduction <add>, %195, %cst_143 [1] : vector<16x32xf32> to vector<16xf32>
    %197 = vector.shape_cast %196 : vector<16xf32> to vector<16x1xf32>
    %cst_144 = arith.constant 3.200000e+01 : f32
    %198 = vector.broadcast %cst_144 : f32 to vector<16x1xf32>
    %199 = arith.divf %197, %198 : vector<16x1xf32>
    %200 = vector.broadcast %199 : vector<16x1xf32> to vector<16x32xf32>
    %201 = arith.subf %195, %200 : vector<16x32xf32>
    %202 = arith.mulf %201, %201 : vector<16x32xf32>
    %cst_145 = arith.constant dense<0.000000e+00> : vector<16xf32>
    %203 = vector.multi_reduction <add>, %202, %cst_145 [1] : vector<16x32xf32> to vector<16xf32>
    %204 = vector.shape_cast %203 : vector<16xf32> to vector<16x1xf32>
    %cst_146 = arith.constant 3.200000e+01 : f32
    %205 = vector.broadcast %cst_146 : f32 to vector<16x1xf32>
    %206 = arith.divf %204, %205 : vector<16x1xf32>
    %207 = vector.broadcast %199 : vector<16x1xf32> to vector<16x32xf32>
    %208 = arith.subf %195, %207 : vector<16x32xf32>
    %cst_147 = arith.constant 9.99999974E-6 : f32
    %209 = vector.broadcast %cst_147 : f32 to vector<16x1xf32>
    %210 = arith.addf %206, %209 : vector<16x1xf32>
    %211 = math.rsqrt %210 : vector<16x1xf32>
    %212 = vector.broadcast %211 : vector<16x1xf32> to vector<16x32xf32>
    %213 = arith.mulf %208, %212 : vector<16x32xf32>
    %c0_148 = arith.constant 0 : index
    %c0_149 = arith.constant 0 : index
    %214 = vector.load %arg9[%c0_148, %c0_149] : memref<1x32xf32, #tpu.memory_space<vmem>>, vector<1x32xf32>
    %215 = vector.broadcast %214 : vector<1x32xf32> to vector<16x32xf32>
    %216 = arith.mulf %213, %215 : vector<16x32xf32>
    %c0_150 = arith.constant 0 : index
    %c0_151 = arith.constant 0 : index
    %217 = vector.load %arg10[%c0_150, %c0_151] : memref<1x32xf32, #tpu.memory_space<vmem>>, vector<1x32xf32>
    %218 = vector.broadcast %217 : vector<1x32xf32> to vector<16x32xf32>
    %219 = arith.addf %216, %218 : vector<16x32xf32>
    %cst_152 = arith.constant 5.000000e-01 : f32
    %220 = vector.broadcast %cst_152 : f32 to vector<16x32xf32>
    %221 = arith.mulf %220, %219 : vector<16x32xf32>
    %cst_153 = arith.constant 0.707106769 : f32
    %222 = vector.broadcast %cst_153 : f32 to vector<16x32xf32>
    %223 = arith.mulf %219, %222 : vector<16x32xf32>
    %224 = math.erf %223 : vector<16x32xf32>
    %cst_154 = arith.constant 1.000000e+00 : f32
    %225 = vector.broadcast %cst_154 : f32 to vector<16x32xf32>
    %226 = arith.addf %225, %224 : vector<16x32xf32>
    %227 = arith.mulf %221, %226 : vector<16x32xf32>
    %c0_155 = arith.constant 0 : index
    %c0_156 = arith.constant 0 : index
    %228 = vector.load %arg12[%c0_155, %c0_156] : memref<16x32xf32, #tpu.memory_space<vmem>>, vector<16x32xf32>
    tpu.vector_store %arg12[%c0_155, %c0_156], %227 {strides = array<i32>} : memref<16x32xf32, #tpu.memory_space<vmem>>, vector<16x32xf32>,
    return
  }
  func.func @transform_0(%arg0: i32) -> (i32, i32) {
    %c0_i32 = arith.constant 0 : i32
    %c0_i32_0 = arith.constant 0 : i32
    return %arg0, %c0_i32 : i32, i32
  }
  func.func @transform_1(%arg0: i32) -> (i32, i32) {
    %c0_i32 = arith.constant 0 : i32
    %c0_i32_0 = arith.constant 0 : i32
    return %arg0, %c0_i32 : i32, i32
  }
  func.func @transform_2(%arg0: i32) -> (i32, i32, i32) {
    %c0_i32 = arith.constant 0 : i32
    %c0_i32_0 = arith.constant 0 : i32
    %c0_i32_1 = arith.constant 0 : i32
    %c0_i32_2 = arith.constant 0 : i32
    return %c0_i32, %c0_i32_0, %c0_i32_1 : i32, i32, i32
  }
  func.func @transform_3(%arg0: i32) -> (i32, i32, i32) {
    %c0_i32 = arith.constant 0 : i32
    %c0_i32_0 = arith.constant 0 : i32
    %c0_i32_1 = arith.constant 0 : i32
    %c0_i32_2 = arith.constant 0 : i32
    return %c0_i32, %c0_i32_0, %c0_i32_1 : i32, i32, i32
  }
  func.func @transform_4(%arg0: i32) -> (i32, i32, i32) {
    %c0_i32 = arith.constant 0 : i32
    %c0_i32_0 = arith.constant 0 : i32
    %c0_i32_1 = arith.constant 0 : i32
    %c0_i32_2 = arith.constant 0 : i32
    return %c0_i32, %c0_i32_0, %c0_i32_1 : i32, i32, i32
  }
  func.func @transform_5(%arg0: i32) -> (i32, i32, i32) {
    %c0_i32 = arith.constant 0 : i32
    %c0_i32_0 = arith.constant 0 : i32
    %c0_i32_1 = arith.constant 0 : i32
    %c0_i32_2 = arith.constant 0 : i32
    return %c0_i32, %c0_i32_0, %c0_i32_1 : i32, i32, i32
  }
  func.func @transform_6(%arg0: i32) -> (i32, i32, i32) {
    %c0_i32 = arith.constant 0 : i32
    %c0_i32_0 = arith.constant 0 : i32
    %c0_i32_1 = arith.constant 0 : i32
    %c0_i32_2 = arith.constant 0 : i32
    return %c0_i32, %c0_i32_0, %c0_i32_1 : i32, i32, i32
  }
  func.func @transform_7(%arg0: i32) -> (i32, i32) {
    %c0_i32 = arith.constant 0 : i32
    %c0_i32_0 = arith.constant 0 : i32
    %c0_i32_1 = arith.constant 0 : i32
    return %c0_i32, %c0_i32_0 : i32, i32
  }
  func.func @transform_8(%arg0: i32) -> (i32, i32) {
    %c0_i32 = arith.constant 0 : i32
    %c0_i32_0 = arith.constant 0 : i32
    %c0_i32_1 = arith.constant 0 : i32
    return %c0_i32, %c0_i32_0 : i32, i32
  }
  func.func @transform_9(%arg0: i32) -> (i32, i32) {
    %c0_i32 = arith.constant 0 : i32
    %c0_i32_0 = arith.constant 0 : i32
    %c0_i32_1 = arith.constant 0 : i32
    return %c0_i32, %c0_i32_0 : i32, i32
  }
  func.func @transform_10(%arg0: i32) -> (i32, i32, i32) {
    %c0_i32 = arith.constant 0 : i32
    %c0_i32_0 = arith.constant 0 : i32
    %c0_i32_1 = arith.constant 0 : i32
    return %c0_i32, %arg0, %c0_i32_0 : i32, i32, i32
  }
  func.func @transform_11(%arg0: i32) -> (i32, i32) {
    %c0_i32 = arith.constant 0 : i32
    %c0_i32_0 = arith.constant 0 : i32
    return %arg0, %c0_i32 : i32, i32
  }
}

</mosaic_0001>

<bundles_post_ra>
// kernel: tpu_custom_call.1
= control target key start
LH: loop header
LB: loop body
LE: loop exit
PB: predicated region body
PF: predicated region fallthrough
CT: control target
= control target key end

     0   :  { %17 = vsyncpa [#allocation3], 0  ;;  %s2940_s0 = inlined_call_operand.vmem [shape: f32[16,32], index: 0, kind: input, shape index: {}]   ;;  %s2941_s1 = inlined_call_operand.vmem [shape: f32[16,6], index: 1, kind: input, shape index: {}]   ;;  %s2942_s2 = inlined_call_operand.hbm [shape: f32[6,32,32], index: 2, kind: input, shape index: {}]   ;;  %s2943_s3 = inlined_call_operand.vmem [shape: f32[6,1,32], index: 3, kind: input, shape index: {}]   ;;  %s2944_s4 = inlined_call_operand.hbm [shape: f32[6,32,32], index: 4, kind: input, shape index: {}]   ;;  %s2945_s5 = inlined_call_operand.vmem [shape: f32[6,1,32], index: 5, kind: input, shape index: {}]   ;;  %s2946_s6 = inlined_call_operand.hbm [shape: f32[6,32,32], index: 6, kind: input, shape index: {}]   ;;  %s2947_s7 = inlined_call_operand.vmem [shape: f32[1,32], index: 7, kind: input, shape index: {}]   ;;  %s2948_s8 = inlined_call_operand.vmem [shape: f32[1,32], index: 8, kind: input, shape index: {}]   ;;  %s2949_s9 = inlined_call_operand.vmem [shape: f32[1,32], index: 9, kind: input, shape index: {}]   ;;  %s2950_s10 = inlined_call_operand.hbm [shape: f32[6,16,32], index: 10, kind: output, shape index: {0}]   ;;  %s2951_s11 = inlined_call_operand.hbm [shape: f32[16,32], index: 11, kind: output, shape index: {1}]  }
   0x1   :  { %18 = vsyncpa [#allocation6], 0 }
   0x2   :  { %19 = vsyncpa [#allocation4], 0 }
   0x3   :  { %20 = vsyncpa [#allocation10], 0  ;;  %s2634_s17 = smov [#allocation5]   ;;  %s2635_s19 = smov [#allocation2]  }
   0x4   :  { %s44_s18 = sshll.u32 %s2634_s17, 4  ;;  %s30_s20 = sshll.u32 %s2635_s19, 4  ;;  %s45_s18 = int_to_ptr.vmem [resolvable:$true] %s44_s18  ;;  %s2707_s20 = int_to_ptr.vmem [resolvable:$true] %s30_s20 }
   0x5   :  { %s2516_s23 = scalar_lea.hbm %s2944_s4, 3072 }
   0x6   :  { %p2517_p0 = scmp.ne.s32.totalorder %s2944_s4, %s2516_s23  ;;  %p2520_p1 = scmp.lt.u32.totalorder %s2516_s23, %s2944_s4 }
   0x8   :  { %p2522_p2 = pnand %p2520_p1, %p2517_p0 }
   0xa   :  { %2525 = shalt.err (!%p2522_p2)
}
   0xb   :  { %s2526_s28 = scalar_lea.vmem %s45_s18, 3072  ;;  %p2531_p4 = scmp.lt.s32.totalorder %s45_s18, %s45_s18 }
   0xc   :  { %p2527_p3 = scmp.ne.s32.totalorder %s45_s18, %s2526_s28  ;;  %p2532_p5 = scmp.lt.s32.totalorder %s2526_s28, %s2526_s28 }
   0xe   :  { %p2533_p6 = por %p2532_p5, %p2531_p4 }
  0x10   :  { %p2534_p7 = pnand %p2533_p6, %p2527_p3 }
  0x12   :  { %2537 = shalt.err (!%p2534_p7)
}
  0x13   :  { %s2636_s29 = smov 128   ;;  %s2637_s30 = smov 8  }
  0x14   :  { %50 = dma.hbm_to_vmem [thread:$0]  %s2944_s4, 3072, %s45_s18, [#allocation6], %s2636_s29, %s2636_s29, %s2637_s30  }
  0x15   :  { %s2538_s16 = scalar_lea.hbm %s2942_s2, 3072 }
  0x16   :  { %p2539_p8 = scmp.ne.s32.totalorder %s2942_s2, %s2538_s16  ;;  %p2542_p9 = scmp.lt.u32.totalorder %s2538_s16, %s2942_s2 }
  0x18   :  { %p2544_p10 = pnand %p2542_p9, %p2539_p8 }
  0x1a   :  { %2547 = shalt.err (!%p2544_p10)
}
  0x1b   :  { %s2548_s23 = scalar_lea.vmem %s2707_s20, 3072  ;;  %p2553_p12 = scmp.lt.s32.totalorder %s2707_s20, %s2707_s20 }
  0x1c   :  { %p2549_p11 = scmp.ne.s32.totalorder %s2707_s20, %s2548_s23  ;;  %p2554_p13 = scmp.lt.s32.totalorder %s2548_s23, %s2548_s23 }
  0x1e   :  { %p2555_p0 = por %p2554_p13, %p2553_p12 }
  0x20   :  { %p2556_p1 = pnand %p2555_p0, %p2549_p11 }
  0x22   :  { %2559 = shalt.err (!%p2556_p1)
}
  0x23   :  { %36 = dma.hbm_to_vmem [thread:$0]  %s2942_s2, 3072, %s2707_s20, [#allocation3], %s2636_s29, %s2636_s29, %s2637_s30  }
  0x24   :  { %s2638_s24 = smov [#allocation7]   ;;  %s2560_s28 = scalar_lea.hbm %s2946_s6, 3072 }
  0x25   :  { %s58_s25 = sshll.u32 %s2638_s24, 4  ;;  %p2561_p2 = scmp.ne.s32.totalorder %s2946_s6, %s2560_s28  ;;  %s59_s25 = int_to_ptr.vmem [resolvable:$true] %s58_s25 }
  0x26   :  { %p2564_p3 = scmp.lt.u32.totalorder %s2560_s28, %s2946_s6 }
  0x28   :  { %p2566_p4 = pnand %p2564_p3, %p2561_p2 }
  0x2a   :  { %2569 = shalt.err (!%p2566_p4)
}
  0x2b   :  { %s2570_s16 = scalar_lea.vmem %s59_s25, 3072  ;;  %p2575_p6 = scmp.lt.s32.totalorder %s59_s25, %s59_s25 }
  0x2c   :  { %p2571_p5 = scmp.ne.s32.totalorder %s59_s25, %s2570_s16  ;;  %p2576_p7 = scmp.lt.s32.totalorder %s2570_s16, %s2570_s16 }
  0x2e   :  { %p2577_p8 = por %p2576_p7, %p2575_p6 }
  0x30   :  { %p2578_p9 = pnand %p2577_p8, %p2571_p5 }
  0x32   :  { %2581 = shalt.err (!%p2578_p9)
}
  0x33   :  { %64 = dma.hbm_to_vmem [thread:$0]  %s2946_s6, 3072, %s59_s25, [#allocation6], %s2636_s29, %s2636_s29, %s2637_s30  }
  0x34   :  { %2626 = dma.done.wait [#allocation3], 3072  }
  0x35   :  { %2627 = vsyncadd [#allocation3], 4294964224 }
  0x36   :  { %2628 = dma.done.wait [#allocation6], 6144  }
  0x37   :  { %2629 = vsyncadd [#allocation6], 4294961152  ;;  %v84_v0 = vld [vmem:[#allocation2] sm:$0xff]  ;;  %v85_v1 = vld [vmem:[#allocation2 + $0x8] sm:$0xff]  ;;  %vm95_vm0 = vcmask 261120   ;;  %v2639_v24 = vmov 0  }
  0x38   :  { %v298_v2 = vld [vmem:[#allocation2 + $0x20] sm:$0xff]  ;;  %v2308_v3 = vpack.c.bf16 %v85_v1, %v84_v0  ;;  %v299_v4 = vld [vmem:[#allocation2 + $0x28] sm:$0xff]  ;;  %v86_v5 = vld [vmem:[#allocation2 + $0x10] sm:$0xff]  ;;  %2476 = vset.pattern.permute.xlu1 %v2639_v24  ;;  %v2640_v25 = vmov 1  }
  0x39   :  { %v87_v6 = vld [vmem:[#allocation2 + $0x18] sm:$0xff]  ;;  %v2324_v7 = vpack.c.bf16 %v299_v4, %v298_v2  ;;  %v300_v9 = vld [vmem:[#allocation2 + $0x30] sm:$0xff]  ;;  %v2762_v11 = vld [vmem:[%s2940_s0] sm:$0xff]  ;;  %2475 = vset.pattern.permute.xlu0 %v2640_v25 }
  0x3a   :  { %v2312_v8 = vpack.c.bf16 %v87_v6, %v86_v5  ;;  %v301_v10 = vld [vmem:[#allocation2 + $0x38] sm:$0xff]  ;;  %2309 = vmatprep.subr.bf16.mxu1 %v2308_v3  ;;  %2118 = vmatprep.mubr.msk.f32.mxu1 %vm95_vm0, %v2762_v11  ;;  %v2771_v13 = vld [vmem:[%s2940_s0 + $0x8] sm:$0xff]  ;;  %v187_v14 = vld [vmem:[#allocation5] sm:$0xff] }
  0x3b   :  { %v2328_v12 = vpack.c.bf16 %v301_v10, %v300_v9  ;;  %2325 = vmatprep.subr.bf16.mxu0 %v2324_v7  ;;  %2311 = vmatpush3.bf16.msra.mxu1 %v2308_v3  ;;  %v188_v15 = vld [vmem:[#allocation5 + $0x8] sm:$0xff]  ;;  %v189_v17 = vld [vmem:[#allocation5 + $0x10] sm:$0xff]  ;;  %v190_v18 = vld [vmem:[#allocation5 + $0x18] sm:$0xff] }
  0x3c   :  { %2327 = vmatpush3.bf16.msra.mxu0 %v2324_v7  ;;  %2313 = vmatprep.subr.bf16.mxu1 %v2312_v8  ;;  %v2316_v16 = vpack.c.bf16 %v188_v15, %v187_v14  ;;  %v2320_v19 = vpack.c.bf16 %v190_v18, %v189_v17  ;;  %v396_v20 = vld [vmem:[#allocation5 + $0x20] sm:$0xff]  ;;  %v397_v21 = vld [vmem:[#allocation5 + $0x28] sm:$0xff]  ;;  %v398_v47 = vld [vmem:[#allocation5 + $0x30] sm:$0xff] }
  0x3d   :  { %2329 = vmatprep.subr.bf16.mxu0 %v2328_v12  ;;  %2140 = vmatprep.mubr.msk.f32.mxu0 %vm95_vm0, %v2762_v11  ;;  %v2332_v22 = vpack.c.bf16 %v397_v21, %v396_v20  ;;  %v2780_v23 = vld [vmem:[%s2941_s1] sm:$0xff]  ;;  %v2787_v26 = vld [vmem:[%s2941_s1 + $0x8] sm:$0xff]  ;;  %v399_v48 = vld [vmem:[#allocation5 + $0x38] sm:$0xff] }
  0x3e   :  { %281 = vperm.xlu1 %2476, %v2780_v23   ;;  %490 = vperm.xlu0 %2475, %v2780_v23   ;;  %v1941_v27 = vld [vmem:[%s2943_s3] ss:$0 sm:$0xff]  ;;  %v1948_v29 = vld [vmem:[%s2943_s3 + $0x1] ss:$0 sm:$0xff]  ;;  %v2336_v54 = vpack.c.bf16 %v399_v48, %v398_v47  ;;  %v671_v58 = vld [vmem:[#allocation2 + $0x48] sm:$0xff] }
  0x3f   :  { %2315 = vmatpush3.bf16.msra.mxu1 %v2312_v8  ;;  %v670_v57 = vld [vmem:[#allocation2 + $0x40] sm:$0xff]  ;;  %v672_v61 = vld [vmem:[#allocation2 + $0x50] sm:$0xff]  ;;  %v673_v62 = vld [vmem:[#allocation2 + $0x58] sm:$0xff] }
  0x40   :  { %2331 = vmatpush3.bf16.msra.mxu0 %v2328_v12  ;;  %2317 = vmatprep.subr.bf16.mxu1 %v2316_v16  ;;  %v2356_v60 = vpack.c.bf16 %v671_v58, %v670_v57  ;;  %v2360_v1 = vpack.c.bf16 %v673_v62, %v672_v61  ;;  %v503_v2 = vld [vmem:[#allocation7 + $0x20] sm:$0xff]  ;;  %v504_v3 = vld [vmem:[#allocation7 + $0x28] sm:$0xff]  ;;  %v505_v5 = vld [vmem:[#allocation7 + $0x30] sm:$0xff] }
  0x41   :  { %v2340_v4 = vpack.c.bf16 %v504_v3, %v503_v2  ;;  %v506_v6 = vld [vmem:[#allocation7 + $0x38] sm:$0xff]  ;;  %v293_v8 = vld [vmem:[#allocation7] sm:$0xff]  ;;  %v294_v9 = vld [vmem:[#allocation7 + $0x8] sm:$0xff] }
  0x42   :  { %2119 = vmatmul.mubr.msk.f32.vlgmr.msra.gmra.mrb[0].mxu1 %vm95_vm0, %v2771_v13  ;;  %286 = vperm.xlu1 %2476, %v2787_v26   ;;  %v2344_v7 = vpack.c.bf16 %v506_v6, %v505_v5  ;;  %v2348_v10 = vpack.c.bf16 %v294_v9, %v293_v8  ;;  %v768_v12 = vld [vmem:[#allocation5 + $0x40] sm:$0xff]  ;;  %v769_v14 = vld [vmem:[#allocation5 + $0x48] sm:$0xff]  ;;  %v771_v17 = vld [vmem:[#allocation5 + $0x58] sm:$0xff] }
  0x43   :  { %2141 = vmatmul.mubr.msk.f32.vlgmr.msra.gmra.mrb[0].mxu0 %vm95_vm0, %v2771_v13  ;;  %2319 = vmatpush3.bf16.msra.mxu1 %v2316_v16  ;;  %v2364_v15 = vpack.c.bf16 %v769_v14, %v768_v12  ;;  %v770_v16 = vld [vmem:[#allocation5 + $0x50] sm:$0xff]  ;;  %v964_v20 = vld [vmem:[#allocation2 + $0x68] sm:$0xff]  ;;  %v1944_v25 = vld [vmem:[%s2945_s5] ss:$0 sm:$0xff] }
  0x44   :  { %2321 = vmatprep.subr.bf16.mxu1 %v2320_v19  ;;  %494 = vperm.xlu0 %2475, %v2787_v26   ;;  %v2368_v18 = vpack.c.bf16 %v771_v17, %v770_v16  ;;  %v875_v47 = vld [vmem:[#allocation7 + $0x40] sm:$0xff]  ;;  %v876_v48 = vld [vmem:[#allocation7 + $0x48] sm:$0xff]  ;;  %v965_v61 = vld [vmem:[#allocation2 + $0x70] sm:$0xff] }
  0x45   :  { %2341 = vmatprep.subr.bf16.mxu0 %v2340_v4  ;;  %v966_v62 = vld [vmem:[#allocation2 + $0x78] sm:$0xff]  ;;  %v1256_v3 = vld [vmem:[#allocation2 + $0x80] sm:$0xff]  ;;  %v1258_v6 = vld [vmem:[#allocation2 + $0x90] sm:$0xff] }
  0x46   :  { %2343 = vmatpush3.bf16.msra.mxu0 %v2340_v4  ;;  %v2384_v2 = vpack.c.bf16 %v966_v62, %v965_v61  ;;  %v1257_v4 = vld [vmem:[#allocation2 + $0x88] sm:$0xff]  ;;  %v877_v9 = vld [vmem:[#allocation7 + $0x50] sm:$0xff]  ;;  %v1061_v14 = vld [vmem:[#allocation5 + $0x60] sm:$0xff] }
  0x47   :  { %2323 = vmatpush3.bf16.msra.mxu1 %v2320_v19  ;;  %2345 = vmatprep.subr.bf16.mxu0 %v2344_v7  ;;  %v963_v19 = vld [vmem:[#allocation2 + $0x60] sm:$0xff]  ;;  %v2404_v5 = vpack.c.bf16 %v1257_v4, %v1256_v3 }
  0x48   :  { %2333 = vmatprep.subr.bf16.mxu1 %v2332_v22  ;;  %v2805_v21 = vpack.c.bf16 %v964_v20, %v963_v19  ;;  %v1354_v17 = vld [vmem:[#allocation5 + $0x80] sm:$0xff]  ;;  %v1356_v20 = vld [vmem:[#allocation5 + $0x90] sm:$0xff] }
  0x4a   :  { %2347 = vmatpush3.bf16.msra.mxu0 %v2344_v7  ;;  %v1259_v7 = vld [vmem:[#allocation2 + $0x98] sm:$0xff] }
  0x4b   :  { %2349 = vmatprep.subr.bf16.mxu0 %v2348_v10  ;;  %v2408_v8 = vpack.c.bf16 %v1259_v7, %v1258_v6 }
  0xbd   :  { %v282_v24 = vpop.permute.xlu1 %281 }
 0x115   :  { %v2120_v28 = vpop.f32.mrb[0].mxu1 }
 0x116   :  { %v174_v30 = vadd.f32 %v2120_v28, %v1941_v27  ;;  %v2142_v31 = vpop.f32.mrb[0].mxu0  ;;  %v168_v32 = vpop.f32.mrb[1].mxu1 }
 0x117   :  { %v169_v33 = vadd.f32 %v1941_v27, %v168_v32  ;;  %v376_v34 = vpop.f32.mrb[1].mxu0  ;;  %v382_v37 = vadd.f32 %v2142_v31, %v1948_v29  ;;  %v287_v28 = vpop.permute.xlu1 %286 }
 0x118   :  { %v180_v35 = vmul.f32 0.70710677, %v174_v30  ;;  %v377_v36 = vadd.f32 %v1948_v29, %v376_v34  ;;  %v178_v49 = vmul.f32 0.5, %v174_v30  ;;  %v491_v32 = vpop.permute.xlu0 %490 }
 0x119   :  { %v179_v38 = vmul.f32 0.70710677, %v169_v33  ;;  %v388_v40 = vmul.f32 0.70710677, %v382_v37  ;;  %v177_v45 = vmul.f32 0.5, %v169_v33  ;;  %v386_v63 = vmul.f32 0.5, %v382_v37 }
 0x11a   :  { %2484 = verf.f32 %v180_v35  ;;  %v387_v39 = vmul.f32 0.70710677, %v377_v36  ;;  %v385_v52 = vmul.f32 0.5, %v377_v36  ;;  %v1952_v35 = vld [vmem:[%s2945_s5 + $0x1] ss:$0 sm:$0xff] }
 0x11b   :  { %2486 = verf.f32 %v179_v38 }
 0x11c   :  { %2488 = verf.f32 %v387_v39  ;;  %v495_v37 = vpop.permute.xlu0 %494 }
 0x11d   :  { %2490 = verf.f32 %v388_v40 }
 0x124   :  { %v2485_v41 = vpop.eup %2484 }
 0x125   :  { %v2487_v42 = vpop.eup %2486  ;;  %v184_v43 = vadd.f32 1.0, %v2485_v41  ;;  %v295_v41 = vld [vmem:[#allocation7 + $0x10] sm:$0xff] }
 0x126   :  { %v2489_v44 = vpop.eup %2488  ;;  %v183_v46 = vadd.f32 1.0, %v2487_v42  ;;  %v296_v42 = vld [vmem:[#allocation7 + $0x18] sm:$0xff] }
 0x127   :  { %v391_v50 = vadd.f32 1.0, %v2489_v44  ;;  %v186_v53 = vmul.f32 %v184_v43, %v178_v49  ;;  %v2491_v55 = vpop.eup %2490 }
 0x128   :  { %v185_v51 = vmul.f32 %v183_v46, %v177_v45  ;;  %v392_v59 = vadd.f32 1.0, %v2491_v55  ;;  %v2352_v45 = vpack.c.bf16 %v296_v42, %v295_v41  ;;  %v1960_v46 = vld [vmem:[%s2943_s3 + $0x2] ss:$0 sm:$0xff]  ;;  %v1970_v42 = vld [vmem:[%s2943_s3 + $0x3] ss:$0 sm:$0xff] }
 0x129   :  { %v393_v56 = vmul.f32 %v391_v50, %v385_v52  ;;  %v2372_v52 = vpack.c.bf16 %v876_v48, %v875_v47 }
 0x12a   :  { %2129 = vmatprep.mubr.msk.f32.mxu1 %vm95_vm0, %v185_v51  ;;  %v394_v0 = vmul.f32 %v392_v59, %v386_v63 }
 0x12b   :  { %2130 = vmatmul.mubr.msk.f32.vlgmr.msra.gmra.mrb[2].mxu1 %vm95_vm0, %v186_v53 }
 0x12c   :  { %2335 = vmatpush3.bf16.msra.mxu1 %v2332_v22  ;;  %2151 = vmatprep.mubr.msk.f32.mxu1 %vm95_vm0, %v393_v56  ;;  %v2641_v22 = vmov 2  }
 0x12d   :  { %2337 = vmatprep.subr.bf16.mxu1 %v2336_v54  ;;  %2478 = vset.pattern.permute.xlu1 %v2641_v22 }
 0x12e   :  { %2477 = vset.pattern.permute.xlu0 %v2641_v22  ;;  %866 = vperm.xlu1 %2478, %v2787_v26  }
 0x12f   :  { %862 = vperm.xlu0 %2477, %v2780_v23  }
 0x130   :  { %2339 = vmatpush3.bf16.msra.mxu1 %v2336_v54 }
 0x131   :  { %2357 = vmatprep.subr.bf16.mxu1 %v2356_v60 }
 0x133   :  { %2152 = vmatmul.mubr.msk.f32.vlgmr.msra.gmra.mrb[4].mxu1 %vm95_vm0, %v394_v0 }
 0x134   :  { %2359 = vmatpush3.bf16.msra.mxu1 %v2356_v60  ;;  %2184 = vmatprep.mubr.msk.f32.mxu1 %vm95_vm0, %v2762_v11 }
 0x135   :  { %2361 = vmatprep.subr.bf16.mxu1 %v2360_v1 }
 0x138   :  { %2363 = vmatpush3.bf16.msra.mxu1 %v2360_v1 }
 0x139   :  { %2365 = vmatprep.subr.bf16.mxu1 %v2364_v15 }
 0x13b   :  { %2185 = vmatmul.mubr.msk.f32.vlgmr.msra.gmra.mrb[6].mxu1 %vm95_vm0, %v2771_v13 }
 0x13c   :  { %2367 = vmatpush3.bf16.msra.mxu1 %v2364_v15  ;;  %v1062_v15 = vld [vmem:[#allocation5 + $0x68] sm:$0xff] }
 0x13d   :  { %2369 = vmatprep.subr.bf16.mxu1 %v2368_v18  ;;  %v2388_v16 = vpack.c.bf16 %v1062_v15, %v1061_v14 }
 0x140   :  { %2371 = vmatpush3.bf16.msra.mxu1 %v2368_v18  ;;  %v1355_v18 = vld [vmem:[#allocation5 + $0x88] sm:$0xff] }
 0x141   :  { %2381 = vmatprep.subr.bf16.mxu1 %v2805_v21  ;;  %v2412_v19 = vpack.c.bf16 %v1355_v18, %v1354_v17  ;;  %v1171_v17 = vld [vmem:[#allocation7 + $0x78] sm:$0xff] }
 0x1fe   :  { %v2131_v27 = vpop.f32.mrb[2].mxu1 }
 0x1ff   :  { %v276_v29 = vadd.f32 %v2131_v27, %v1944_v25  ;;  %v270_v30 = vpop.f32.mrb[3].mxu1 }
 0x200   :  { %v271_v31 = vadd.f32 %v1944_v25, %v270_v30  ;;  %v1550_v25 = vld [vmem:[#allocation2 + $0xa8] sm:$0xff]  ;;  %v1964_v30 = vld [vmem:[%s2945_s5 + $0x2] ss:$0 sm:$0xff] }
 0x201   :  { %v290_v33 = vmul.f32 %v287_v28, %v276_v29  ;;  %v2642_v28 = vmov 3   ;;  %v2643_v29 = vmov 4  }
 0x202   :  { %v289_v34 = vmul.f32 %v282_v24, %v271_v31  ;;  %v1549_v24 = vld [vmem:[#allocation2 + $0xa0] sm:$0xff]  ;;  %2479 = vset.pattern.permute.xlu1 %v2642_v28  ;;  %2480 = vset.pattern.permute.xlu0 %v2642_v28 }
 0x203   :  { %292 = vst.msk [vmem:[#allocation8 + $0x8] sm:$0xff] %vm95_vm0, %v290_v33  ;;  %v2838_v27 = vpack.c.bf16 %v1550_v25, %v1549_v24  ;;  %1155 = vperm.xlu1 %2479, %v2780_v23   ;;  %1159 = vperm.xlu0 %2480, %v2787_v26  }
 0x204   :  { %291 = vst.msk [vmem:[#allocation8] sm:$0xff] %vm95_vm0, %v289_v34 }
 0x206   :  { %v2153_v36 = vpop.f32.mrb[4].mxu1 }
 0x207   :  { %v486_v38 = vadd.f32 %v2153_v36, %v1952_v35  ;;  %v480_v39 = vpop.f32.mrb[5].mxu1  ;;  %2481 = vset.pattern.permute.xlu1 %v2643_v29 }
 0x208   :  { %v481_v40 = vadd.f32 %v1952_v35, %v480_v39  ;;  %1448 = vperm.xlu1 %2481, %v2780_v23   ;;  %v863_v35 = vpop.permute.xlu0 %862 }
 0x209   :  { %v498_v43 = vmul.f32 %v495_v37, %v486_v38  ;;  %v1063_v37 = vld [vmem:[#allocation5 + $0x70] sm:$0xff]  ;;  %v1064_v38 = vld [vmem:[#allocation5 + $0x78] sm:$0xff] }
 0x20a   :  { %v497_v44 = vmul.f32 %v491_v32, %v481_v40  ;;  %v867_v32 = vpop.permute.xlu1 %866  ;;  %v2392_v41 = vpack.c.bf16 %v1064_v38, %v1063_v37 }
 0x20b   :  { %501 = vst.msk [vmem:[#allocation8 + $0x18] sm:$0xff] %vm95_vm0, %v498_v43 }
 0x20c   :  { %500 = vst.msk [vmem:[#allocation8 + $0x10] sm:$0xff] %vm95_vm0, %v497_v44  ;;  %2162 = vmatprep.mubr.msk.f32.mxu0 %vm95_vm0, %v497_v44  ;;  %1452 = vperm.xlu1 %2481, %v2787_v26   ;;  %v1169_v44 = vld [vmem:[#allocation7 + $0x68] sm:$0xff] }
 0x20d   :  { %2163 = vmatmul.mubr.msk.f32.vlgmr.msra.gmra.mrb[2].mxu0 %vm95_vm0, %v498_v43  ;;  %v1168_v43 = vld [vmem:[#allocation7 + $0x60] sm:$0xff] }
 0x20e   :  { %2351 = vmatpush3.bf16.msra.mxu0 %v2348_v10  ;;  %2173 = vmatprep.mubr.msk.f32.mxu0 %vm95_vm0, %v289_v34  ;;  %v2186_v49 = vpop.f32.mrb[6].mxu1  ;;  %v878_v10 = vld [vmem:[#allocation7 + $0x58] sm:$0xff]  ;;  %v2396_v48 = vpack.c.bf16 %v1169_v44, %v1168_v43  ;;  %v1649_v43 = vld [vmem:[#allocation5 + $0xb0] sm:$0xff] }
 0x20f   :  { %v754_v50 = vadd.f32 %v2186_v49, %v1960_v46  ;;  %v748_v51 = vpop.f32.mrb[7].mxu1  ;;  %2353 = vmatprep.subr.bf16.mxu0 %v2352_v45  ;;  %v2376_v12 = vpack.c.bf16 %v878_v10, %v877_v9  ;;  %v1552_v9 = vld [vmem:[#allocation2 + $0xb8] sm:$0xff] }
 0x210   :  { %v749_v53 = vadd.f32 %v1960_v46, %v748_v51  ;;  %v1650_v44 = vld [vmem:[#allocation5 + $0xb8] sm:$0xff] }
 0x211   :  { %v760_v54 = vmul.f32 0.70710677, %v754_v50  ;;  %v758_v63 = vmul.f32 0.5, %v754_v50 }
 0x212   :  { %v759_v55 = vmul.f32 0.70710677, %v749_v53  ;;  %2355 = vmatpush3.bf16.msra.mxu0 %v2352_v45  ;;  %v757_v59 = vmul.f32 0.5, %v749_v53 }
 0x213   :  { %2492 = verf.f32 %v760_v54  ;;  %2373 = vmatprep.subr.bf16.mxu0 %v2372_v52 }
 0x214   :  { %2494 = verf.f32 %v759_v55 }
 0x215   :  { %2174 = vmatmul.mubr.msk.f32.vlgmr.msra.gmra.mrb[2].mxu0 %vm95_vm0, %v290_v33 }
 0x216   :  { %2375 = vmatpush3.bf16.msra.mxu0 %v2372_v52  ;;  %v1980_v52 = vld [vmem:[%s2943_s3 + $0x4] ss:$0 sm:$0xff] }
 0x217   :  { %2377 = vmatprep.subr.bf16.mxu0 %v2376_v12 }
 0x21a   :  { %2379 = vmatpush3.bf16.msra.mxu0 %v2376_v12 }
 0x21b   :  { %2389 = vmatprep.subr.bf16.mxu0 %v2388_v16 }
 0x21d   :  { %v2493_v56 = vpop.eup %2492 }
 0x21e   :  { %v2495_v57 = vpop.eup %2494  ;;  %v764_v58 = vadd.f32 1.0, %v2493_v56 }
 0x21f   :  { %v763_v60 = vadd.f32 1.0, %v2495_v57 }
 0x220   :  { %v766_v1 = vmul.f32 %v764_v58, %v758_v63 }
 0x221   :  { %v765_v0 = vmul.f32 %v763_v60, %v757_v59 }
 0x223   :  { %2195 = vmatprep.mubr.msk.f32.mxu1 %vm95_vm0, %v765_v0 }
 0x224   :  { %2196 = vmatmul.mubr.msk.f32.vlgmr.msra.gmra.mrb[8].mxu1 %vm95_vm0, %v766_v1 }
 0x225   :  { %2383 = vmatpush3.bf16.msra.mxu1 %v2805_v21  ;;  %2217 = vmatprep.mubr.msk.f32.mxu1 %vm95_vm0, %v2762_v11  ;;  %v1357_v21 = vld [vmem:[#allocation5 + $0x98] sm:$0xff] }
 0x226   :  { %2385 = vmatprep.subr.bf16.mxu1 %v2384_v2  ;;  %v2416_v22 = vpack.c.bf16 %v1357_v21, %v1356_v20  ;;  %v1462_v20 = vld [vmem:[#allocation7 + $0x88] sm:$0xff] }
 0x229   :  { %2387 = vmatpush3.bf16.msra.mxu1 %v2384_v2 }
 0x22a   :  { %2405 = vmatprep.subr.bf16.mxu1 %v2404_v5 }
 0x22c   :  { %2218 = vmatmul.mubr.msk.f32.vlgmr.msra.gmra.mrb[10].mxu1 %vm95_vm0, %v2771_v13 }
 0x22d   :  { %2407 = vmatpush3.bf16.msra.mxu1 %v2404_v5  ;;  %2250 = vmatprep.mubr.msk.f32.mxu1 %vm95_vm0, %v2762_v11 }
 0x22e   :  { %2409 = vmatprep.subr.bf16.mxu1 %v2408_v8 }
 0x231   :  { %2411 = vmatpush3.bf16.msra.mxu1 %v2408_v8  ;;  %v1551_v8 = vld [vmem:[#allocation2 + $0xb0] sm:$0xff] }
 0x232   :  { %2413 = vmatprep.subr.bf16.mxu1 %v2412_v19  ;;  %v2432_v15 = vpack.c.bf16 %v1552_v9, %v1551_v8 }
 0x234   :  { %2251 = vmatmul.mubr.msk.f32.vlgmr.msra.gmra.mrb[12].mxu1 %vm95_vm0, %v2771_v13 }
 0x235   :  { %2415 = vmatpush3.bf16.msra.mxu1 %v2412_v19  ;;  %v1461_v19 = vld [vmem:[#allocation7 + $0x80] sm:$0xff] }
 0x236   :  { %2417 = vmatprep.subr.bf16.mxu1 %v2416_v22  ;;  %v2420_v21 = vpack.c.bf16 %v1462_v20, %v1461_v19 }
 0x239   :  { %2419 = vmatpush3.bf16.msra.mxu1 %v2416_v22  ;;  %v2644_v22 = vmov 5  }
 0x23a   :  { %2429 = vmatprep.subr.bf16.mxu1 %v2838_v27  ;;  %2483 = vset.pattern.permute.xlu1 %v2644_v22 }
 0x23b   :  { %2482 = vset.pattern.permute.xlu0 %v2644_v22  ;;  %1745 = vperm.xlu1 %2483, %v2787_v26  }
 0x23c   :  { %1741 = vperm.xlu0 %2482, %v2780_v23   ;;  %v1984_v23 = vld [vmem:[%s2945_s5 + $0x4] ss:$0 sm:$0xff] }
 0x282   :  { %v1160_v25 = vpop.permute.xlu0 %1159 }
 0x2f7   :  { %v2197_v31 = vpop.f32.mrb[8].mxu1 }
 0x2f8   :  { %v858_v33 = vadd.f32 %v2197_v31, %v1964_v30  ;;  %v852_v34 = vpop.f32.mrb[9].mxu1  ;;  %v1463_v31 = vld [vmem:[#allocation7 + $0x90] sm:$0xff] }
 0x2f9   :  { %v853_v36 = vadd.f32 %v1964_v30, %v852_v34 }
 0x2fa   :  { %v870_v39 = vmul.f32 %v867_v32, %v858_v33  ;;  %v1464_v32 = vld [vmem:[#allocation7 + $0x98] sm:$0xff] }
 0x2fb   :  { %v869_v40 = vmul.f32 %v863_v35, %v853_v36  ;;  %v2424_v26 = vpack.c.bf16 %v1464_v32, %v1463_v31  ;;  %v1647_v35 = vld [vmem:[#allocation5 + $0xa0] sm:$0xff]  ;;  %v1648_v36 = vld [vmem:[#allocation5 + $0xa8] sm:$0xff] }
 0x2fc   :  { %873 = vst.msk [vmem:[#allocation8 + $0x28] sm:$0xff] %vm95_vm0, %v870_v39 }
 0x2fd   :  { %872 = vst.msk [vmem:[#allocation8 + $0x20] sm:$0xff] %vm95_vm0, %v869_v40  ;;  %2206 = vmatprep.mubr.msk.f32.mxu0 %vm95_vm0, %v869_v40 }
 0x2fe   :  { %2207 = vmatmul.mubr.msk.f32.vlgmr.msra.gmra.mrb[2].mxu0 %vm95_vm0, %v870_v39 }
 0x2ff   :  { %v2219_v45 = vpop.f32.mrb[10].mxu1  ;;  %2391 = vmatpush3.bf16.msra.mxu0 %v2388_v16  ;;  %v1170_v16 = vld [vmem:[#allocation7 + $0x70] sm:$0xff] }
 0x300   :  { %v1047_v46 = vadd.f32 %v2219_v45, %v1970_v42  ;;  %v1041_v47 = vpop.f32.mrb[11].mxu1  ;;  %2393 = vmatprep.subr.bf16.mxu0 %v2392_v41  ;;  %v2400_v18 = vpack.c.bf16 %v1171_v17, %v1170_v16  ;;  %v1999_v16 = vld [vmem:[%s2947_s7] ss:$0 sm:$0xff] }
 0x301   :  { %v1042_v49 = vadd.f32 %v1970_v42, %v1041_v47  ;;  %v2440_v47 = vpack.c.bf16 %v1650_v44, %v1649_v43 }
 0x302   :  { %v1053_v50 = vmul.f32 0.70710677, %v1047_v46  ;;  %v1051_v0 = vmul.f32 0.5, %v1047_v46 }
 0x303   :  { %v1052_v51 = vmul.f32 0.70710677, %v1042_v49  ;;  %2395 = vmatpush3.bf16.msra.mxu0 %v2392_v41  ;;  %v1050_v62 = vmul.f32 0.5, %v1042_v49  ;;  %v2436_v41 = vpack.c.bf16 %v1648_v36, %v1647_v35  ;;  %v1754_v49 = vld [vmem:[#allocation7 + $0xa0] sm:$0xff] }
 0x304   :  { %2496 = verf.f32 %v1053_v50  ;;  %2397 = vmatprep.subr.bf16.mxu0 %v2396_v48  ;;  %v1755_v50 = vld [vmem:[#allocation7 + $0xa8] sm:$0xff] }
 0x305   :  { %2498 = verf.f32 %v1052_v51 }
 0x307   :  { %v2252_v53 = vpop.f32.mrb[12].mxu1 }
 0x308   :  { %v1340_v54 = vadd.f32 %v2252_v53, %v1980_v52  ;;  %v1334_v55 = vpop.f32.mrb[13].mxu1 }
 0x309   :  { %v1335_v56 = vadd.f32 %v1980_v52, %v1334_v55 }
 0x30a   :  { %v1346_v57 = vmul.f32 0.70710677, %v1340_v54  ;;  %v1344_v10 = vmul.f32 0.5, %v1340_v54  ;;  %v2444_v54 = vpack.c.bf16 %v1755_v50, %v1754_v49 }
 0x30b   :  { %v1345_v58 = vmul.f32 0.70710677, %v1335_v56  ;;  %v1343_v6 = vmul.f32 0.5, %v1335_v56 }
 0x30c   :  { %2500 = verf.f32 %v1346_v57 }
 0x30d   :  { %2502 = verf.f32 %v1345_v58 }
 0x30e   :  { %v2497_v59 = vpop.eup %2496 }
 0x30f   :  { %v2499_v60 = vpop.eup %2498  ;;  %v1057_v61 = vadd.f32 1.0, %v2497_v59 }
 0x310   :  { %v1056_v63 = vadd.f32 1.0, %v2499_v60 }
 0x311   :  { %v1059_v2 = vmul.f32 %v1057_v61, %v1051_v0 }
 0x312   :  { %v1058_v1 = vmul.f32 %v1056_v63, %v1050_v62 }
 0x314   :  { %2228 = vmatprep.mubr.msk.f32.mxu0 %vm95_vm0, %v1058_v1 }
 0x315   :  { %2229 = vmatmul.mubr.msk.f32.vlgmr.msra.gmra.mrb[4].mxu0 %vm95_vm0, %v1059_v2  ;;  %v1756_v2 = vld [vmem:[#allocation7 + $0xb0] sm:$0xff] }
 0x316   :  { %v2501_v3 = vpop.eup %2500  ;;  %2399 = vmatpush3.bf16.msra.mxu0 %v2396_v48  ;;  %v1990_v48 = vld [vmem:[%s2943_s3 + $0x5] ss:$0 sm:$0xff] }
 0x317   :  { %v2503_v4 = vpop.eup %2502  ;;  %v1350_v5 = vadd.f32 1.0, %v2501_v3  ;;  %2401 = vmatprep.subr.bf16.mxu0 %v2400_v18  ;;  %v1757_v3 = vld [vmem:[#allocation7 + $0xb8] sm:$0xff] }
 0x318   :  { %v1349_v7 = vadd.f32 1.0, %v2503_v4  ;;  %v2448_v4 = vpack.c.bf16 %v1757_v3, %v1756_v2 }
 0x319   :  { %v1352_v14 = vmul.f32 %v1350_v5, %v1344_v10  ;;  %v1994_v5 = vld [vmem:[%s2945_s5 + $0x5] ss:$0 sm:$0xff]  ;;  %v1742_v10 = vpop.permute.xlu0 %1741 }
 0x31a   :  { %v1351_v12 = vmul.f32 %v1349_v7, %v1343_v6  ;;  %2403 = vmatpush3.bf16.msra.mxu0 %v2400_v18 }
 0x31b   :  { %2421 = vmatprep.subr.bf16.mxu0 %v2420_v21 }
 0x31c   :  { %2261 = vmatprep.mubr.msk.f32.mxu1 %vm95_vm0, %v1351_v12 }
 0x31d   :  { %2262 = vmatmul.mubr.msk.f32.vlgmr.msra.gmra.mrb[14].mxu1 %vm95_vm0, %v1352_v14 }
 0x31e   :  { %2431 = vmatpush3.bf16.msra.mxu1 %v2838_v27  ;;  %2283 = vmatprep.mubr.msk.f32.mxu1 %vm95_vm0, %v2762_v11  ;;  %v1156_v11 = vpop.permute.xlu1 %1155 }
 0x31f   :  { %2433 = vmatprep.subr.bf16.mxu1 %v2432_v15 }
 0x322   :  { %2435 = vmatpush3.bf16.msra.mxu1 %v2432_v15  ;;  %v1449_v30 = vpop.permute.xlu1 %1448 }
 0x325   :  { %2284 = vmatmul.mubr.msk.f32.vlgmr.msra.gmra.mrb[16].mxu1 %vm95_vm0, %v2771_v13  ;;  %v1974_v13 = vld [vmem:[%s2945_s5 + $0x3] ss:$0 sm:$0xff]  ;;  %s2645_s5 = smov [#allocation8]  }
 0x326   :  { %v1453_v38 = vpop.permute.xlu1 %1452  ;;  %s1912_s7 = sshll.u32 %s2645_s5, 4  ;;  %s1913_s7 = int_to_ptr.vmem [resolvable:$true] %s1912_s7 }
 0x327   :  { %s2582_s26 = scalar_lea.vmem %s1913_s7, 1536  ;;  %p2587_p11 = scmp.lt.s32.totalorder %s1913_s7, %s1913_s7 }
 0x328   :  { %p2583_p10 = scmp.ne.s32.totalorder %s1913_s7, %s2582_s26  ;;  %p2588_p12 = scmp.lt.s32.totalorder %s2582_s26, %s2582_s26 }
 0x32a   :  { %v1746_v7 = vpop.permute.xlu1 %1745  ;;  %p2589_p13 = por %p2588_p12, %p2587_p11 }
 0x32c   :  { %p2590_p0 = pnand %p2589_p13, %p2583_p10 }
 0x3e8   :  { %v2230_v24 = vpop.f32.mrb[4].mxu0 }
 0x3e9   :  { %v1151_v27 = vadd.f32 %v2230_v24, %v1974_v13  ;;  %v1145_v28 = vpop.f32.mrb[5].mxu0 }
 0x3ea   :  { %v1146_v29 = vadd.f32 %v1974_v13, %v1145_v28 }
 0x3eb   :  { %v1163_v33 = vmul.f32 %v1160_v25, %v1151_v27 }
 0x3ec   :  { %v1162_v34 = vmul.f32 %v1156_v11, %v1146_v29 }
 0x3ed   :  { %1166 = vst.msk [vmem:[#allocation8 + $0x38] sm:$0xff] %vm95_vm0, %v1163_v33 }
 0x3ee   :  { %1165 = vst.msk [vmem:[#allocation8 + $0x30] sm:$0xff] %vm95_vm0, %v1162_v34  ;;  %2239 = vmatprep.mubr.msk.f32.mxu0 %vm95_vm0, %v1162_v34 }
 0x3ef   :  { %2240 = vmatmul.mubr.msk.f32.vlgmr.msra.gmra.mrb[2].mxu0 %vm95_vm0, %v1163_v33 }
 0x3f0   :  { %v2263_v37 = vpop.f32.mrb[14].mxu1  ;;  %2423 = vmatpush3.bf16.msra.mxu0 %v2420_v21 }
 0x3f1   :  { %v1444_v39 = vadd.f32 %v2263_v37, %v1984_v23  ;;  %v1438_v40 = vpop.f32.mrb[15].mxu1  ;;  %2425 = vmatprep.subr.bf16.mxu0 %v2424_v26 }
 0x3f2   :  { %v1439_v42 = vadd.f32 %v1984_v23, %v1438_v40 }
 0x3f3   :  { %v1456_v45 = vmul.f32 %v1453_v38, %v1444_v39 }
 0x3f4   :  { %v1455_v46 = vmul.f32 %v1449_v30, %v1439_v42  ;;  %2427 = vmatpush3.bf16.msra.mxu0 %v2424_v26 }
 0x3f5   :  { %1459 = vst.msk [vmem:[#allocation8 + $0x48] sm:$0xff] %vm95_vm0, %v1456_v45  ;;  %2437 = vmatprep.subr.bf16.mxu0 %v2436_v41 }
 0x3f6   :  { %1458 = vst.msk [vmem:[#allocation8 + $0x40] sm:$0xff] %vm95_vm0, %v1455_v46  ;;  %2272 = vmatprep.mubr.msk.f32.mxu0 %vm95_vm0, %v1455_v46 }
 0x3f7   :  { %2273 = vmatmul.mubr.msk.f32.vlgmr.msra.gmra.mrb[2].mxu0 %vm95_vm0, %v1456_v45 }
 0x3f8   :  { %v2285_v51 = vpop.f32.mrb[16].mxu1  ;;  %2439 = vmatpush3.bf16.msra.mxu0 %v2436_v41 }
 0x3f9   :  { %v1633_v52 = vadd.f32 %v2285_v51, %v1990_v48  ;;  %v1627_v53 = vpop.f32.mrb[17].mxu1  ;;  %2441 = vmatprep.subr.bf16.mxu0 %v2440_v47 }
 0x3fa   :  { %v1628_v55 = vadd.f32 %v1990_v48, %v1627_v53 }
 0x3fb   :  { %v1639_v56 = vmul.f32 0.70710677, %v1633_v52  ;;  %v1637_v63 = vmul.f32 0.5, %v1633_v52 }
 0x3fc   :  { %v1638_v57 = vmul.f32 0.70710677, %v1628_v55  ;;  %2443 = vmatpush3.bf16.msra.mxu0 %v2440_v47  ;;  %v1636_v61 = vmul.f32 0.5, %v1628_v55 }
 0x3fd   :  { %2504 = verf.f32 %v1639_v56  ;;  %2445 = vmatprep.subr.bf16.mxu0 %v2444_v54 }
 0x3fe   :  { %2506 = verf.f32 %v1638_v57 }
 0x407   :  { %v2505_v58 = vpop.eup %2504 }
 0x408   :  { %v2507_v59 = vpop.eup %2506  ;;  %v1643_v60 = vadd.f32 1.0, %v2505_v58 }
 0x409   :  { %v1642_v62 = vadd.f32 1.0, %v2507_v59 }
 0x40a   :  { %v1645_v1 = vmul.f32 %v1643_v60, %v1637_v63 }
 0x40b   :  { %v1644_v0 = vmul.f32 %v1642_v62, %v1636_v61 }
 0x40d   :  { %2294 = vmatprep.mubr.msk.f32.mxu0 %vm95_vm0, %v1644_v0 }
 0x40e   :  { %2295 = vmatmul.mubr.msk.f32.vlgmr.msra.gmra.mrb[6].mxu0 %vm95_vm0, %v1645_v1 }
 0x40f   :  { %2447 = vmatpush3.bf16.msra.mxu0 %v2444_v54 }
 0x410   :  { %2449 = vmatprep.subr.bf16.mxu0 %v2448_v4 }
 0x413   :  { %2451 = vmatpush3.bf16.msra.mxu0 %v2448_v4 }
 0x4e1   :  { %v2296_v6 = vpop.f32.mrb[6].mxu0 }
 0x4e2   :  { %v1737_v8 = vadd.f32 %v2296_v6, %v1994_v5  ;;  %v1731_v9 = vpop.f32.mrb[7].mxu0 }
 0x4e3   :  { %v1732_v12 = vadd.f32 %v1994_v5, %v1731_v9 }
 0x4e4   :  { %v1749_v14 = vmul.f32 %v1746_v7, %v1737_v8 }
 0x4e5   :  { %v1748_v15 = vmul.f32 %v1742_v10, %v1732_v12 }
 0x4e6   :  { %1752 = vst.msk [vmem:[#allocation8 + $0x58] sm:$0xff] %vm95_vm0, %v1749_v14 }
 0x4e7   :  { %1751 = vst.msk [vmem:[#allocation8 + $0x50] sm:$0xff] %vm95_vm0, %v1748_v15  ;;  %2305 = vmatprep.mubr.msk.f32.mxu0 %vm95_vm0, %v1748_v15 }
 0x4e8   :  { %2306 = vmatmul.mubr.msk.f32.vlgmr.msra.gmra.mrb[2].mxu0 %vm95_vm0, %v1749_v14 }
 0x5bb   :  { %v2307_v17 = vpop.f32.mrb[2].mxu0 }
 0x5bc   :  { %v1849_v18 = vadd.f32 %v2307_v17, %v1999_v16  ;;  %v1830_v19 = vpop.f32.mrb[3].mxu0 }
 0x5bd   :  { %v1848_v20 = vadd.f32 %v1999_v16, %v1830_v19 }
 0x5be   :  { %v1853_v21 = vsel %vm95_vm0, %v1849_v18, 0.0 }
 0x5bf   :  { %1854 = vadd.xlane.f32.xlu0 %v1853_v21  ;;  %v1850_v22 = vsel %vm95_vm0, %v1848_v20, 0.0 }
 0x5c0   :  { %1851 = vadd.xlane.f32.xlu1 %v1850_v22 }
 0x64c   :  { %v1855_v11 = vpop.xlane.xlu0 %1854 }
 0x64d   :  { %v1858_v13 = vmul.f32 0.03125, %v1855_v11  ;;  %v1852_v24 = vpop.xlane.xlu1 %1851 }
 0x64e   :  { %v1857_v25 = vmul.f32 0.03125, %v1852_v24 }
 0x64f   :  { %v1860_v27 = vsub.f32 %v1849_v18, %v1858_v13 }
 0x650   :  { %v1859_v28 = vsub.f32 %v1848_v20, %v1857_v25 }
 0x651   :  { %v1862_v29 = vmul.f32 %v1860_v27, %v1860_v27 }
 0x652   :  { %v1861_v30 = vmul.f32 %v1859_v28, %v1859_v28 }
 0x653   :  { %v1866_v31 = vsel %vm95_vm0, %v1862_v29, 0.0 }
 0x654   :  { %1867 = vadd.xlane.f32.xlu1 %v1866_v31  ;;  %v1863_v32 = vsel %vm95_vm0, %v1861_v30, 0.0 }
 0x655   :  { %1864 = vadd.xlane.f32.xlu0 %v1863_v32 }
 0x656   :  { %2593 = shalt.err (!%p2590_p0)
}
 0x657   :  { %s2594_s28 = scalar_lea.hbm %s2950_s10, 1536 }
 0x658   :  { %p2595_p1 = scmp.ne.s32.totalorder %s2950_s10, %s2594_s28  ;;  %p2598_p2 = scmp.lt.u32.totalorder %s2594_s28, %s2950_s10 }
 0x65a   :  { %p2600_p3 = pnand %p2598_p2, %p2595_p1 }
 0x65c   :  { %2603 = shalt.err (!%p2600_p3)
}
 0x65d   :  { %1918 = dma.vmem_to_hbm [thread:$0]  %s1913_s7, 1536, %s2950_s10, [#allocation4], %s2636_s29, %s2636_s29, %s2637_s30  }
 0x65e   :  { %v2000_v38 = vld [vmem:[%s2948_s8] ss:$0 sm:$0xff]  ;;  %s2646_s8 = smov [#allocation9]  }
 0x65f   :  { %v2001_v42 = vld [vmem:[%s2949_s9] ss:$0 sm:$0xff]  ;;  %s1924_s10 = sshll.u32 %s2646_s8, 4  ;;  %s1925_s10 = int_to_ptr.vmem [resolvable:$true] %s1924_s10 }
 0x660   :  { %s2604_s9 = scalar_lea.vmem %s1925_s10, 256  ;;  %p2609_p5 = scmp.lt.s32.totalorder %s1925_s10, %s1925_s10 }
 0x661   :  { %p2605_p4 = scmp.ne.s32.totalorder %s1925_s10, %s2604_s9  ;;  %p2610_p6 = scmp.lt.s32.totalorder %s2604_s9, %s2604_s9 }
 0x663   :  { %p2611_p7 = por %p2610_p6, %p2609_p5 }
 0x665   :  { %p2612_p8 = pnand %p2611_p7, %p2605_p4 }
 0x6e1   :  { %v1868_v33 = vpop.xlane.xlu1 %1867 }
 0x6e2   :  { %v1870_v34 = vmul.f32 0.03125, %v1868_v33  ;;  %v1865_v26 = vpop.xlane.xlu0 %1864 }
 0x6e3   :  { %v1869_v23 = vmul.f32 0.03125, %v1865_v26 }
 0x6e4   :  { %v1872_v35 = vadd.f32 1e-05, %v1870_v34 }
 0x6e5   :  { %v1871_v36 = vadd.f32 1e-05, %v1869_v23 }
 0x6e6   :  { %2508 = vrsqrt.f32 %v1872_v35 }
 0x6e7   :  { %2510 = vrsqrt.f32 %v1871_v36 }
 0x6f0   :  { %v2509_v37 = vpop.eup %2508 }
 0x6f1   :  { %v2511_v39 = vpop.eup %2510  ;;  %v1876_v40 = vmul.f32 %v2509_v37, %v1860_v27 }
 0x6f2   :  { %v1875_v41 = vmul.f32 %v2511_v39, %v1859_v28 }
 0x6f3   :  { %v1885_v43 = vmul.f32 %v2000_v38, %v1876_v40 }
 0x6f4   :  { %v1884_v44 = vmul.f32 %v2000_v38, %v1875_v41 }
 0x6f5   :  { %v1894_v45 = vadd.f32 %v2001_v42, %v1885_v43 }
 0x6f6   :  { %v1893_v46 = vadd.f32 %v2001_v42, %v1884_v44 }
 0x6f7   :  { %v1898_v47 = vmul.f32 0.70710677, %v1894_v45  ;;  %v1896_v51 = vmul.f32 0.5, %v1894_v45 }
 0x6f8   :  { %v1897_v48 = vmul.f32 0.70710677, %v1893_v46  ;;  %v1895_v53 = vmul.f32 0.5, %v1893_v46 }
 0x6f9   :  { %2512 = verf.f32 %v1898_v47 }
 0x6fa   :  { %2514 = verf.f32 %v1897_v48 }
 0x703   :  { %v2513_v49 = vpop.eup %2512 }
 0x704   :  { %v2515_v50 = vpop.eup %2514  ;;  %v1902_v52 = vadd.f32 1.0, %v2513_v49 }
 0x705   :  { %v1901_v54 = vadd.f32 1.0, %v2515_v50 }
 0x706   :  { %v1904_v55 = vmul.f32 %v1902_v52, %v1896_v51 }
 0x707   :  { %v1903_v56 = vmul.f32 %v1901_v54, %v1895_v53 }
 0x708   :  { %1906 = vst.msk [vmem:[#allocation9 + $0x8] sm:$0xff] %vm95_vm0, %v1904_v55 }
 0x709   :  { %1905 = vst.msk [vmem:[#allocation9] sm:$0xff] %vm95_vm0, %v1903_v56 }
 0x70a   :  { %2615 = shalt.err (!%p2612_p8)
}
 0x70b   :  { %s2616_s22 = scalar_lea.hbm %s2951_s11, 256 }
 0x70c   :  { %p2617_p9 = scmp.ne.s32.totalorder %s2951_s11, %s2616_s22  ;;  %p2620_p10 = scmp.lt.u32.totalorder %s2616_s22, %s2951_s11 }
 0x70e   :  { %p2622_p11 = pnand %p2620_p10, %p2617_p9 }
 0x710   :  { %2625 = shalt.err (!%p2622_p11)
}
 0x711   :  { %1930 = dma.vmem_to_hbm [thread:$0]  %s1925_s10, 256, %s2951_s11, [#allocation10], %s2636_s29, %s2636_s29, %s2637_s30  }
 0x712   :  { %2630 = dma.done.wait [#allocation4], 1536  }
 0x713   :  { %2631 = vsyncadd [#allocation4], 4294965760 }
 0x714   :  { %2632 = dma.done.wait [#allocation10], 256  }
 0x715   :  { %2633 = vsyncadd [#allocation10], 4294967040 }
 0x716   :  { %1937 = vsyncpa [#allocation3], 1 }
 0x717   :  { %1938 = vsyncpa [#allocation6], 1 }
 0x718   :  { %1939 = vsyncpa [#allocation4], 1 }
 0x719   :  { %1940 = vsyncpa [#allocation10], 1 }

</bundles_post_ra>
